<compile_context>
chip_gen: v7x
topology: tpu7x:2x2x1
jax: 0.10.0
libtpu: 0.0.40
codegen_flags: <defaults>
</compile_context>

<pallas_src>
import functools

import jax
import jax.numpy as jnp
import numpy as np
from jax import lax
from jax.experimental import pallas as pl
from jax.experimental.pallas import tpu as pltpu

C1, C2 = 64, 32          # conv1 / conv2 output channels
K1, K3 = 9, 5            # conv1 / conv3 kernel sizes
P1, P3 = 4, 2            # row-shift half-extents of conv1 / conv3 taps


# --------------------------------------------------------------------------
# Fused kernel: B images per grid step, everything resident in VMEM.
# --------------------------------------------------------------------------
def _srcnn_kernel(x_ref, t1_ref, b1_ref, w2g_ref, b2g_ref, t3_ref, bmap_ref,
                  o_ref, x1c_ref, x3c_ref, *, B, H, W, Wp, G):
    f32, bf16 = jnp.float32, jnp.bfloat16
    WC2 = W * C2
    GC1, GC2 = G * C1, G * C2

    # ---- conv1: fused-K LHS  x1c[b, y, ky*W + u] = x[b, y + ky - P1, u] ----
    # Zero only the out-of-range row strips; the interior is rewritten each
    # step (do NOT hoist under program_id==0: unsafe with 'parallel' megacore).
    x = x_ref[...]                                             # (B, H, W) bf16
    for ky in range(K1):
        y_lo = min(max(0, P1 - ky), H)
        y_hi = max(min(H, H + P1 - ky), y_lo)
        if y_lo > 0:
            x1c_ref[:, 0:y_lo, ky * W:(ky + 1) * W] = \
                jnp.zeros((B, y_lo, W), bf16)
        if y_hi < H:
            x1c_ref[:, y_hi:H, ky * W:(ky + 1) * W] = \
                jnp.zeros((B, H - y_hi, W), bf16)
        if y_hi > y_lo:
            x1c_ref[:, y_lo:y_hi, ky * W:(ky + 1) * W] = \
                x[:, y_lo + ky - P1:y_hi + ky - P1, :]

    # One MXU matmul: M = B*H, K = 9*W (single K pass), N = W*C1.
    lhs1 = x1c_ref[...].reshape(B * H, K1 * W)
    acc1 = jnp.dot(lhs1, t1_ref[...], preferred_element_type=f32)
    h1 = jnp.maximum(acc1 + b1_ref[...], 0.0).astype(bf16)     # (B*H, W*C1)

    # ---- conv2: grouped 1x1 conv, G image columns per matmul ---------------
    # Constant (G*C1, G*C2) block-diagonal weight: K=256 / N=128 MXU tiles,
    # VMEM footprint independent of W (replaces the W^2-scaling block-diag).
    parts = []
    for gi in range(W // G):
        a2 = jnp.dot(h1[:, gi * GC1:(gi + 1) * GC1], w2g_ref[...],
                     preferred_element_type=f32)               # (B*H, G*C2)
        parts.append(jnp.maximum(a2 + b2g_ref[...], 0.0).astype(bf16))
    h2 = jnp.concatenate(parts, axis=1) if len(parts) > 1 else parts[0]
    h2_3d = h2.reshape(B, H, WC2)                              # (B, H, W*C2)

    # ---- conv3: fused-K LHS  x3c[b, y, ky*WC2 + j] = h2[b, y + ky - P3, j] --
    for ky in range(K3):
        y_lo = min(max(0, P3 - ky), H)
        y_hi = max(min(H, H + P3 - ky), y_lo)
        if y_lo > 0:
            x3c_ref[:, 0:y_lo, ky * WC2:(ky + 1) * WC2] = \
                jnp.zeros((B, y_lo, WC2), bf16)
        if y_hi < H:
            x3c_ref[:, y_hi:H, ky * WC2:(ky + 1) * WC2] = \
                jnp.zeros((B, H - y_hi, WC2), bf16)
        if y_hi > y_lo:
            x3c_ref[:, y_lo:y_hi, ky * WC2:(ky + 1) * WC2] = \
                h2_3d[:, y_lo + ky - P3:y_hi + ky - P3, :]

    # One MXU matmul: K = 5*W*C2, N = Wp (lane-dense output slab, >= 128).
    lhs3 = x3c_ref[...].reshape(B * H, K3 * WC2)
    acc3 = jnp.dot(lhs3, t3_ref[...], preferred_element_type=f32)  # (B*H, Wp)
    # bias map = conv3 bias + contribution of conv2's padding ring.
    o_ref[...] = (acc3.reshape(B, H, Wp) + bmap_ref[...]).astype(o_ref.dtype)


# --------------------------------------------------------------------------
# Wrapper: build fused-lane weight tensors (weights only -- all tiny).
# --------------------------------------------------------------------------
def _prep_constants(params, H, W, Wp, G):
    (w1, b1), (w2, b2), (w3, b3) = params
    f32, bf16 = jnp.float32, jnp.bfloat16

    # conv1: fused-K Toeplitz over (ky, width); width zero-padding folded in.
    #   T1[ky*W + u, ox*C1 + co] = w1[ky, u - ox + P1, 0, co]
    t1 = jnp.zeros((K1, W, W, C1), f32)
    for ox in range(W):
        lo, hi = max(0, ox - P1), min(W, ox + P1 + 1)
        t1 = t1.at[:, lo:hi, ox, :].set(w1[:, lo - ox + P1:hi - ox + P1, 0, :])
    t1cat = t1.reshape(K1 * W, W * C1).astype(bf16)
    b1row = jnp.tile(b1, W).reshape(1, W * C1).astype(f32)

    # conv2: grouped block-diagonal 1x1 weight (size independent of W).
    w2g = jnp.zeros((G, C1, G, C2), f32)
    for g in range(G):
        w2g = w2g.at[g, :, g, :].set(w2[0, 0])
    w2g = w2g.reshape(G * C1, G * C2).astype(bf16)
    b2g = jnp.tile(b2, G).reshape(1, G * C2).astype(f32)

    # conv3 (interior taps): fused-K Toeplitz over (ky, col, channel);
    # N padded to Wp lanes so the output store is lane-dense.
    #   T3[ky*W*C2 + q*C2 + c, ox] = w3[ky, q + P3 - ox, c, 0]
    t3 = jnp.zeros((K3, W, C2, W), f32)
    for ox in range(W):
        lo, hi = max(0, ox - P3), min(W, ox + P3 + 1)
        t3 = t3.at[:, lo:hi, :, ox].set(w3[:, lo + P3 - ox:hi + P3 - ox, :, 0])
    t3cat = jnp.pad(t3.reshape(K3 * W * C2, W),
                    ((0, 0), (0, Wp - W))).astype(bf16)

    # conv3 taps landing on conv2's padding ring (value relu(b2)) or on conv3's
    # own zero padding, plus the conv3 bias -> constant (H, Wp) bias map.
    ring = jnp.zeros((H + 4, W + 4, C2), f32)
    ring = ring.at[1:-1, 1:-1, :].set(jnp.maximum(b2, 0.0))
    ring = ring.at[2:-2, 2:-2, :].set(0.0)
    bias_map = lax.conv_general_dilated(
        ring[None].astype(bf16), w3.astype(bf16), (1, 1), "VALID",
        dimension_numbers=("NHWC", "HWIO", "NHWC"),
        preferred_element_type=f32)[0, :, :, 0] + b3[0]
    bmap = jnp.pad(bias_map, ((0, 0), (0, Wp - W)))
    return t1cat, b1row, w2g, b2g, t3cat, bmap


def _pick_batch(n, H):
    # Target ~256 matmul rows per grid step (fills the v6e/v7x MXU), but keep
    # the grid length >= 2 when n >= 2 so both v7x TensorCores get work.
    b = max(1, min(n, 256 // max(1, H)))
    if n >= 2:
        b = max(1, min(b, (n + 1) // 2))
    return b


def _pick_group(W):
    for g in (4, 2, 1):
        if W % g == 0:
            return g
    return 1


@jax.jit
def srcnn_forward(x_nchw, params):
    n, c, H, W = x_nchw.shape
    assert c == 1, "SRCNN expects a single input channel"
    B = _pick_batch(n, H)
    G = _pick_group(W)
    Wp = 128 * ((W + 127) // 128)            # lane-dense output slab width

    t1cat, b1row, w2g, b2g, t3cat, bmap = _prep_constants(params, H, W, Wp, G)

    n_pad = ((n + B - 1) // B) * B
    x_hw = x_nchw[:, 0, :, :].astype(jnp.bfloat16)            # (N, H, W)
    if n_pad != n:
        x_hw = jnp.pad(x_hw, ((0, n_pad - n), (0, 0), (0, 0)))

    # FLOPs the kernel actually issues (no W-inflated conv2 term).
    M = n_pad * H
    flops = (2 * M * (K1 * W) * (W * C1)
             + 2 * M * (W // G) * (G * C1) * (G * C2)
             + 2 * M * (K3 * W * C2) * Wp)
    bytes_accessed = (x_hw.size * 2 + t1cat.size * 2 + w2g.size * 2
                      + t3cat.size * 2 + b1row.size * 4 + b2g.size * 4
                      + bmap.size * 4 + n_pad * H * Wp * 4)

    kernel = functools.partial(_srcnn_kernel, B=B, H=H, W=W, Wp=Wp, G=G)
    out = pl.pallas_call(
        kernel,
        out_shape=jax.ShapeDtypeStruct((n_pad, H, Wp), jnp.float32),
        grid=(n_pad // B,),
        in_specs=[
            pl.BlockSpec((B, H, W), lambda i: (i, 0, 0)),         # images
            pl.BlockSpec((K1 * W, W * C1), lambda i: (0, 0)),     # conv1 Toeplitz
            pl.BlockSpec((1, W * C1), lambda i: (0, 0)),          # conv1 bias (tiled)
            pl.BlockSpec((G * C1, G * C2), lambda i: (0, 0)),     # conv2 grouped 1x1
            pl.BlockSpec((1, G * C2), lambda i: (0, 0)),          # conv2 bias (tiled)
            pl.BlockSpec((K3 * W * C2, Wp), lambda i: (0, 0)),    # conv3 Toeplitz
            pl.BlockSpec((H, Wp), lambda i: (0, 0)),              # conv3 bias map
        ],
        out_specs=pl.BlockSpec((B, H, Wp), lambda i: (i, 0, 0)),
        scratch_shapes=[
            pltpu.VMEM((B, H, K1 * W), jnp.bfloat16),       # conv1 fused-K LHS
            pltpu.VMEM((B, H, K3 * W * C2), jnp.bfloat16),  # conv3 fused-K LHS
        ],
        compiler_params=pltpu.CompilerParams(
            dimension_semantics=("parallel",),
            vmem_limit_bytes=32 * 1024 * 1024),
        cost_estimate=pl.CostEstimate(flops=flops, transcendentals=0,
                                      bytes_accessed=bytes_accessed),
    )(x_hw, t1cat, b1row, w2g, b2g, t3cat, bmap)

    return out[:n, None, :, :W]                               # -> (n, 1, H, W)


# --------------------------------------------------------------------------
# Parameter init (shapes match the PyTorch module) and pure-JAX reference.
# --------------------------------------------------------------------------
def init_srcnn_params(key):
    ks = jax.random.split(key, 6)

    def conv_params(kw_key, kb_key, kh, kw, cin, cout):
        fan_in = cin * kh * kw
        bound = 1.0 / np.sqrt(fan_in)
        w = jax.random.uniform(kw_key, (kh, kw, cin, cout), jnp.float32,
                               -bound, bound)
        b = jax.random.uniform(kb_key, (cout,), jnp.float32, -bound, bound)
        return w, b

    w1, b1 = conv_params(ks[0], ks[1], 9, 9, 1, 64)
    w2, b2 = conv_params(ks[2], ks[3], 1, 1, 64, 32)
    w3, b3 = conv_params(ks[4], ks[5], 5, 5, 32, 1)
    return (w1, b1), (w2, b2), (w3, b3)


def srcnn_forward_ref(x_nchw, params, compute_dtype=jnp.float32):
    (w1, b1), (w2, b2), (w3, b3) = params

    def conv(x, w, b, pad, relu):
        y = lax.conv_general_dilated(
            x.astype(compute_dtype), w.astype(compute_dtype),
            window_strides=(1, 1), padding=[(pad, pad), (pad, pad)],
            dimension_numbers=("NHWC", "HWIO", "NHWC"),
            preferred_element_type=jnp.float32)
        y = y + b[None, None, None, :]
        return jnp.maximum(y, 0.0) if relu else y

    x = jnp.transpose(x_nchw, (0, 2, 3, 1))
    out = conv(x, w1, b1, 4, True)
    out = conv(out, w2, b2, 1, True)
    out = conv(out, w3, b3, 1, False)
    return jnp.transpose(out, (0, 3, 1, 2))


if __name__ == "__main__":
    key = jax.random.PRNGKey(0)
    k_param, k_x = jax.random.split(key)

    params = init_srcnn_params(k_param)
    x = jax.random.normal(k_x, (2, 1, 16, 16), jnp.float32)   # NCHW, 1 channel

    out = jax.block_until_ready(srcnn_forward(x, params))
    assert out.shape == (2, 1, 16, 16), out.shape

    # Kernel uses bf16 MXU operands with f32 accumulation: check tightly
    # against a bf16-operand reference, loosely against the pure-f32 spec.
    ref_bf16 = jax.block_until_ready(
        srcnn_forward_ref(x, params, compute_dtype=jnp.bfloat16))
    np.testing.assert_allclose(np.asarray(out), np.asarray(ref_bf16),
                               rtol=5e-3, atol=5e-3)
    ref_f32 = jax.block_until_ready(srcnn_forward_ref(x, params))
    np.testing.assert_allclose(np.asarray(out), np.asarray(ref_f32),
                               rtol=5e-2, atol=5e-2)
    print("KERNEL_OK")
</pallas_src>

<mosaic_0001>
module attributes {stable_mosaic.version = 11 : i64} {
  func.func @_srcnn_kernel(%arg0: i32, %arg1: memref<1x16x16xbf16, #tpu.memory_space<vmem>>, %arg2: memref<144x1024xbf16, #tpu.memory_space<vmem>>, %arg3: memref<1x1024xf32, #tpu.memory_space<vmem>>, %arg4: memref<256x128xbf16, #tpu.memory_space<vmem>>, %arg5: memref<1x128xf32, #tpu.memory_space<vmem>>, %arg6: memref<2560x128xbf16, #tpu.memory_space<vmem>>, %arg7: memref<16x128xf32, #tpu.memory_space<vmem>>, %arg8: memref<1x16x128xf32, #tpu.memory_space<vmem>>, %arg9: memref<1x16x144xbf16, #tpu.memory_space<vmem>>, %arg10: memref<1x16x2560xbf16, #tpu.memory_space<vmem>>) attributes {dimension_semantics = [#tpu.dimension_semantics<parallel>], iteration_bounds = array<i64: 2>, scalar_prefetch = 0 : i64, scratch_operands = 2 : i64, tpu.core_type = #tpu.core_type<tc>, window_params = [{transform_indices = @transform_0, window_bounds = array<i64: 1, 16, 16>}, {pipeline_mode = #tpu.pipeline_mode<synchronous>, transform_indices = @transform_1, window_bounds = array<i64: 144, 1024>}, {pipeline_mode = #tpu.pipeline_mode<synchronous>, transform_indices = @transform_2, window_bounds = array<i64: 1, 1024>}, {pipeline_mode = #tpu.pipeline_mode<synchronous>, transform_indices = @transform_3, window_bounds = array<i64: 256, 128>}, {pipeline_mode = #tpu.pipeline_mode<synchronous>, transform_indices = @transform_4, window_bounds = array<i64: 1, 128>}, {pipeline_mode = #tpu.pipeline_mode<synchronous>, transform_indices = @transform_5, window_bounds = array<i64: 2560, 128>}, {pipeline_mode = #tpu.pipeline_mode<synchronous>, transform_indices = @transform_6, window_bounds = array<i64: 16, 128>}, {transform_indices = @transform_7, window_bounds = array<i64: 1, 16, 128>}]} {
    %c0 = arith.constant 0 : index
    %c0_0 = arith.constant 0 : index
    %c0_1 = arith.constant 0 : index
    %0 = vector.load %arg1[%c0, %c0_0, %c0_1] : memref<1x16x16xbf16, #tpu.memory_space<vmem>>, vector<1x16x16xbf16>
    %cst = arith.constant 0.000000e+00 : bf16
    %1 = vector.broadcast %cst : bf16 to vector<1x4x16xbf16>
    %c0_2 = arith.constant 0 : index
    %c0_3 = arith.constant 0 : index
    %c0_4 = arith.constant 0 : index
    %2 = vector.load %arg9[%c0_2, %c0_3, %c0_4] : memref<1x16x144xbf16, #tpu.memory_space<vmem>>, vector<1x4x16xbf16>
    tpu.vector_store %arg9[%c0_2, %c0_3, %c0_4], %1 {strides = array<i32>} : memref<1x16x144xbf16, #tpu.memory_space<vmem>>, vector<1x4x16xbf16>,
    %3 = vector.extract_strided_slice %0 {offsets = [0, 0, 0], sizes = [1, 12, 16], strides = [1, 1, 1]} : vector<1x16x16xbf16> to vector<1x12x16xbf16>
    %c0_5 = arith.constant 0 : index
    %c4 = arith.constant 4 : index
    %c0_6 = arith.constant 0 : index
    %4 = vector.load %arg9[%c0_5, %c4, %c0_6] : memref<1x16x144xbf16, #tpu.memory_space<vmem>>, vector<1x12x16xbf16>
    tpu.vector_store %arg9[%c0_5, %c4, %c0_6], %3 {strides = array<i32>} : memref<1x16x144xbf16, #tpu.memory_space<vmem>>, vector<1x12x16xbf16>,
    %cst_7 = arith.constant 0.000000e+00 : bf16
    %5 = vector.broadcast %cst_7 : bf16 to vector<1x3x16xbf16>
    %c0_8 = arith.constant 0 : index
    %c0_9 = arith.constant 0 : index
    %c16 = arith.constant 16 : index
    %6 = vector.load %arg9[%c0_8, %c0_9, %c16] : memref<1x16x144xbf16, #tpu.memory_space<vmem>>, vector<1x3x16xbf16>
    tpu.vector_store %arg9[%c0_8, %c0_9, %c16], %5 {strides = array<i32>} : memref<1x16x144xbf16, #tpu.memory_space<vmem>>, vector<1x3x16xbf16>,
    %7 = vector.extract_strided_slice %0 {offsets = [0, 0, 0], sizes = [1, 13, 16], strides = [1, 1, 1]} : vector<1x16x16xbf16> to vector<1x13x16xbf16>
    %c0_10 = arith.constant 0 : index
    %c3 = arith.constant 3 : index
    %c16_11 = arith.constant 16 : index
    %8 = vector.load %arg9[%c0_10, %c3, %c16_11] : memref<1x16x144xbf16, #tpu.memory_space<vmem>>, vector<1x13x16xbf16>
    tpu.vector_store %arg9[%c0_10, %c3, %c16_11], %7 {strides = array<i32>} : memref<1x16x144xbf16, #tpu.memory_space<vmem>>, vector<1x13x16xbf16>,
    %cst_12 = arith.constant 0.000000e+00 : bf16
    %9 = vector.broadcast %cst_12 : bf16 to vector<1x2x16xbf16>
    %c0_13 = arith.constant 0 : index
    %c0_14 = arith.constant 0 : index
    %c32 = arith.constant 32 : index
    %10 = vector.load %arg9[%c0_13, %c0_14, %c32] : memref<1x16x144xbf16, #tpu.memory_space<vmem>>, vector<1x2x16xbf16>
    tpu.vector_store %arg9[%c0_13, %c0_14, %c32], %9 {strides = array<i32>} : memref<1x16x144xbf16, #tpu.memory_space<vmem>>, vector<1x2x16xbf16>,
    %11 = vector.extract_strided_slice %0 {offsets = [0, 0, 0], sizes = [1, 14, 16], strides = [1, 1, 1]} : vector<1x16x16xbf16> to vector<1x14x16xbf16>
    %c0_15 = arith.constant 0 : index
    %c2 = arith.constant 2 : index
    %c32_16 = arith.constant 32 : index
    %12 = vector.load %arg9[%c0_15, %c2, %c32_16] : memref<1x16x144xbf16, #tpu.memory_space<vmem>>, vector<1x14x16xbf16>
    tpu.vector_store %arg9[%c0_15, %c2, %c32_16], %11 {strides = array<i32>} : memref<1x16x144xbf16, #tpu.memory_space<vmem>>, vector<1x14x16xbf16>,
    %cst_17 = arith.constant 0.000000e+00 : bf16
    %13 = vector.broadcast %cst_17 : bf16 to vector<1x1x16xbf16>
    %c0_18 = arith.constant 0 : index
    %c0_19 = arith.constant 0 : index
    %c48 = arith.constant 48 : index
    %14 = vector.load %arg9[%c0_18, %c0_19, %c48] : memref<1x16x144xbf16, #tpu.memory_space<vmem>>, vector<1x1x16xbf16>
    tpu.vector_store %arg9[%c0_18, %c0_19, %c48], %13 {strides = array<i32>} : memref<1x16x144xbf16, #tpu.memory_space<vmem>>, vector<1x1x16xbf16>,
    %15 = vector.extract_strided_slice %0 {offsets = [0, 0, 0], sizes = [1, 15, 16], strides = [1, 1, 1]} : vector<1x16x16xbf16> to vector<1x15x16xbf16>
    %c0_20 = arith.constant 0 : index
    %c1 = arith.constant 1 : index
    %c48_21 = arith.constant 48 : index
    %16 = vector.load %arg9[%c0_20, %c1, %c48_21] : memref<1x16x144xbf16, #tpu.memory_space<vmem>>, vector<1x15x16xbf16>
    tpu.vector_store %arg9[%c0_20, %c1, %c48_21], %15 {strides = array<i32>} : memref<1x16x144xbf16, #tpu.memory_space<vmem>>, vector<1x15x16xbf16>,
    %c0_22 = arith.constant 0 : index
    %c0_23 = arith.constant 0 : index
    %c64 = arith.constant 64 : index
    %17 = vector.load %arg9[%c0_22, %c0_23, %c64] : memref<1x16x144xbf16, #tpu.memory_space<vmem>>, vector<1x16x16xbf16>
    tpu.vector_store %arg9[%c0_22, %c0_23, %c64], %0 {strides = array<i32>} : memref<1x16x144xbf16, #tpu.memory_space<vmem>>, vector<1x16x16xbf16>,
    %cst_24 = arith.constant 0.000000e+00 : bf16
    %18 = vector.broadcast %cst_24 : bf16 to vector<1x1x16xbf16>
    %c0_25 = arith.constant 0 : index
    %c15 = arith.constant 15 : index
    %c80 = arith.constant 80 : index
    %19 = vector.load %arg9[%c0_25, %c15, %c80] : memref<1x16x144xbf16, #tpu.memory_space<vmem>>, vector<1x1x16xbf16>
    tpu.vector_store %arg9[%c0_25, %c15, %c80], %18 {strides = array<i32>} : memref<1x16x144xbf16, #tpu.memory_space<vmem>>, vector<1x1x16xbf16>,
    %20 = vector.extract_strided_slice %0 {offsets = [0, 1, 0], sizes = [1, 15, 16], strides = [1, 1, 1]} : vector<1x16x16xbf16> to vector<1x15x16xbf16>
    %c0_26 = arith.constant 0 : index
    %c0_27 = arith.constant 0 : index
    %c80_28 = arith.constant 80 : index
    %21 = vector.load %arg9[%c0_26, %c0_27, %c80_28] : memref<1x16x144xbf16, #tpu.memory_space<vmem>>, vector<1x15x16xbf16>
    tpu.vector_store %arg9[%c0_26, %c0_27, %c80_28], %20 {strides = array<i32>} : memref<1x16x144xbf16, #tpu.memory_space<vmem>>, vector<1x15x16xbf16>,
    %cst_29 = arith.constant 0.000000e+00 : bf16
    %22 = vector.broadcast %cst_29 : bf16 to vector<1x2x16xbf16>
    %c0_30 = arith.constant 0 : index
    %c14 = arith.constant 14 : index
    %c96 = arith.constant 96 : index
    %23 = vector.load %arg9[%c0_30, %c14, %c96] : memref<1x16x144xbf16, #tpu.memory_space<vmem>>, vector<1x2x16xbf16>
    tpu.vector_store %arg9[%c0_30, %c14, %c96], %22 {strides = array<i32>} : memref<1x16x144xbf16, #tpu.memory_space<vmem>>, vector<1x2x16xbf16>,
    %24 = vector.extract_strided_slice %0 {offsets = [0, 2, 0], sizes = [1, 14, 16], strides = [1, 1, 1]} : vector<1x16x16xbf16> to vector<1x14x16xbf16>
    %c0_31 = arith.constant 0 : index
    %c0_32 = arith.constant 0 : index
    %c96_33 = arith.constant 96 : index
    %25 = vector.load %arg9[%c0_31, %c0_32, %c96_33] : memref<1x16x144xbf16, #tpu.memory_space<vmem>>, vector<1x14x16xbf16>
    tpu.vector_store %arg9[%c0_31, %c0_32, %c96_33], %24 {strides = array<i32>} : memref<1x16x144xbf16, #tpu.memory_space<vmem>>, vector<1x14x16xbf16>,
    %cst_34 = arith.constant 0.000000e+00 : bf16
    %26 = vector.broadcast %cst_34 : bf16 to vector<1x3x16xbf16>
    %c0_35 = arith.constant 0 : index
    %c13 = arith.constant 13 : index
    %c112 = arith.constant 112 : index
    %27 = vector.load %arg9[%c0_35, %c13, %c112] : memref<1x16x144xbf16, #tpu.memory_space<vmem>>, vector<1x3x16xbf16>
    tpu.vector_store %arg9[%c0_35, %c13, %c112], %26 {strides = array<i32>} : memref<1x16x144xbf16, #tpu.memory_space<vmem>>, vector<1x3x16xbf16>,
    %28 = vector.extract_strided_slice %0 {offsets = [0, 3, 0], sizes = [1, 13, 16], strides = [1, 1, 1]} : vector<1x16x16xbf16> to vector<1x13x16xbf16>
    %c0_36 = arith.constant 0 : index
    %c0_37 = arith.constant 0 : index
    %c112_38 = arith.constant 112 : index
    %29 = vector.load %arg9[%c0_36, %c0_37, %c112_38] : memref<1x16x144xbf16, #tpu.memory_space<vmem>>, vector<1x13x16xbf16>
    tpu.vector_store %arg9[%c0_36, %c0_37, %c112_38], %28 {strides = array<i32>} : memref<1x16x144xbf16, #tpu.memory_space<vmem>>, vector<1x13x16xbf16>,
    %cst_39 = arith.constant 0.000000e+00 : bf16
    %30 = vector.broadcast %cst_39 : bf16 to vector<1x4x16xbf16>
    %c0_40 = arith.constant 0 : index
    %c12 = arith.constant 12 : index
    %c128 = arith.constant 128 : index
    %31 = vector.load %arg9[%c0_40, %c12, %c128] : memref<1x16x144xbf16, #tpu.memory_space<vmem>>, vector<1x4x16xbf16>
    tpu.vector_store %arg9[%c0_40, %c12, %c128], %30 {strides = array<i32>} : memref<1x16x144xbf16, #tpu.memory_space<vmem>>, vector<1x4x16xbf16>,
    %32 = vector.extract_strided_slice %0 {offsets = [0, 4, 0], sizes = [1, 12, 16], strides = [1, 1, 1]} : vector<1x16x16xbf16> to vector<1x12x16xbf16>
    %c0_41 = arith.constant 0 : index
    %c0_42 = arith.constant 0 : index
    %c128_43 = arith.constant 128 : index
    %33 = vector.load %arg9[%c0_41, %c0_42, %c128_43] : memref<1x16x144xbf16, #tpu.memory_space<vmem>>, vector<1x12x16xbf16>
    tpu.vector_store %arg9[%c0_41, %c0_42, %c128_43], %32 {strides = array<i32>} : memref<1x16x144xbf16, #tpu.memory_space<vmem>>, vector<1x12x16xbf16>,
    %c0_44 = arith.constant 0 : index
    %c0_45 = arith.constant 0 : index
    %c0_46 = arith.constant 0 : index
    %34 = vector.load %arg9[%c0_44, %c0_45, %c0_46] : memref<1x16x144xbf16, #tpu.memory_space<vmem>>, vector<1x16x144xbf16>
    %35 = vector.shape_cast %34 : vector<1x16x144xbf16> to vector<16x144xbf16>
    %c0_47 = arith.constant 0 : index
    %c0_48 = arith.constant 0 : index
    %36 = vector.load %arg2[%c0_47, %c0_48] : memref<144x1024xbf16, #tpu.memory_space<vmem>>, vector<144x1024xbf16>
    %cst_49 = arith.constant dense<0.000000e+00> : vector<16x1024xf32>
    %37 = tpu.matmul %35, %36, %cst_49 {dimension_numbers = #tpu.dot_dimension_numbers<[1], [0], [0], [1], [0, 0, 1, 1], [], []>} : vector<16x144xbf16>, vector<144x1024xbf16>, vector<16x1024xf32> -> vector<16x1024xf32>
    %c0_50 = arith.constant 0 : index
    %c0_51 = arith.constant 0 : index
    %38 = vector.load %arg3[%c0_50, %c0_51] : memref<1x1024xf32, #tpu.memory_space<vmem>>, vector<1x1024xf32>
    %39 = vector.broadcast %38 : vector<1x1024xf32> to vector<16x1024xf32>
    %40 = arith.addf %37, %39 : vector<16x1024xf32>
    %cst_52 = arith.constant 0.000000e+00 : f32
    %41 = vector.broadcast %cst_52 : f32 to vector<16x1024xf32>
    %42 = arith.maximumf %40, %41 : vector<16x1024xf32>
    %43 = arith.truncf %42 : vector<16x1024xf32> to vector<16x1024xbf16>
    %44 = vector.extract_strided_slice %43 {offsets = [0, 0], sizes = [16, 256], strides = [1, 1]} : vector<16x1024xbf16> to vector<16x256xbf16>
    %c0_53 = arith.constant 0 : index
    %c0_54 = arith.constant 0 : index
    %45 = vector.load %arg4[%c0_53, %c0_54] : memref<256x128xbf16, #tpu.memory_space<vmem>>, vector<256x128xbf16>
    %cst_55 = arith.constant dense<0.000000e+00> : vector<16x128xf32>
    %46 = tpu.matmul %44, %45, %cst_55 {dimension_numbers = #tpu.dot_dimension_numbers<[1], [0], [0], [1], [0, 0, 1, 1], [], []>} : vector<16x256xbf16>, vector<256x128xbf16>, vector<16x128xf32> -> vector<16x128xf32>
    %c0_56 = arith.constant 0 : index
    %c0_57 = arith.constant 0 : index
    %47 = vector.load %arg5[%c0_56, %c0_57] : memref<1x128xf32, #tpu.memory_space<vmem>>, vector<1x128xf32>
    %48 = vector.broadcast %47 : vector<1x128xf32> to vector<16x128xf32>
    %49 = arith.addf %46, %48 : vector<16x128xf32>
    %cst_58 = arith.constant 0.000000e+00 : f32
    %50 = vector.broadcast %cst_58 : f32 to vector<16x128xf32>
    %51 = arith.maximumf %49, %50 : vector<16x128xf32>
    %52 = arith.truncf %51 : vector<16x128xf32> to vector<16x128xbf16>
    %53 = vector.extract_strided_slice %43 {offsets = [0, 256], sizes = [16, 256], strides = [1, 1]} : vector<16x1024xbf16> to vector<16x256xbf16>
    %c0_59 = arith.constant 0 : index
    %c0_60 = arith.constant 0 : index
    %54 = vector.load %arg4[%c0_59, %c0_60] : memref<256x128xbf16, #tpu.memory_space<vmem>>, vector<256x128xbf16>
    %cst_61 = arith.constant dense<0.000000e+00> : vector<16x128xf32>
    %55 = tpu.matmul %53, %54, %cst_61 {dimension_numbers = #tpu.dot_dimension_numbers<[1], [0], [0], [1], [0, 0, 1, 1], [], []>} : vector<16x256xbf16>, vector<256x128xbf16>, vector<16x128xf32> -> vector<16x128xf32>
    %c0_62 = arith.constant 0 : index
    %c0_63 = arith.constant 0 : index
    %56 = vector.load %arg5[%c0_62, %c0_63] : memref<1x128xf32, #tpu.memory_space<vmem>>, vector<1x128xf32>
    %57 = vector.broadcast %56 : vector<1x128xf32> to vector<16x128xf32>
    %58 = arith.addf %55, %57 : vector<16x128xf32>
    %cst_64 = arith.constant 0.000000e+00 : f32
    %59 = vector.broadcast %cst_64 : f32 to vector<16x128xf32>
    %60 = arith.maximumf %58, %59 : vector<16x128xf32>
    %61 = arith.truncf %60 : vector<16x128xf32> to vector<16x128xbf16>
    %62 = vector.extract_strided_slice %43 {offsets = [0, 512], sizes = [16, 256], strides = [1, 1]} : vector<16x1024xbf16> to vector<16x256xbf16>
    %c0_65 = arith.constant 0 : index
    %c0_66 = arith.constant 0 : index
    %63 = vector.load %arg4[%c0_65, %c0_66] : memref<256x128xbf16, #tpu.memory_space<vmem>>, vector<256x128xbf16>
    %cst_67 = arith.constant dense<0.000000e+00> : vector<16x128xf32>
    %64 = tpu.matmul %62, %63, %cst_67 {dimension_numbers = #tpu.dot_dimension_numbers<[1], [0], [0], [1], [0, 0, 1, 1], [], []>} : vector<16x256xbf16>, vector<256x128xbf16>, vector<16x128xf32> -> vector<16x128xf32>
    %c0_68 = arith.constant 0 : index
    %c0_69 = arith.constant 0 : index
    %65 = vector.load %arg5[%c0_68, %c0_69] : memref<1x128xf32, #tpu.memory_space<vmem>>, vector<1x128xf32>
    %66 = vector.broadcast %65 : vector<1x128xf32> to vector<16x128xf32>
    %67 = arith.addf %64, %66 : vector<16x128xf32>
    %cst_70 = arith.constant 0.000000e+00 : f32
    %68 = vector.broadcast %cst_70 : f32 to vector<16x128xf32>
    %69 = arith.maximumf %67, %68 : vector<16x128xf32>
    %70 = arith.truncf %69 : vector<16x128xf32> to vector<16x128xbf16>
    %71 = vector.extract_strided_slice %43 {offsets = [0, 768], sizes = [16, 256], strides = [1, 1]} : vector<16x1024xbf16> to vector<16x256xbf16>
    %c0_71 = arith.constant 0 : index
    %c0_72 = arith.constant 0 : index
    %72 = vector.load %arg4[%c0_71, %c0_72] : memref<256x128xbf16, #tpu.memory_space<vmem>>, vector<256x128xbf16>
    %cst_73 = arith.constant dense<0.000000e+00> : vector<16x128xf32>
    %73 = tpu.matmul %71, %72, %cst_73 {dimension_numbers = #tpu.dot_dimension_numbers<[1], [0], [0], [1], [0, 0, 1, 1], [], []>} : vector<16x256xbf16>, vector<256x128xbf16>, vector<16x128xf32> -> vector<16x128xf32>
    %c0_74 = arith.constant 0 : index
    %c0_75 = arith.constant 0 : index
    %74 = vector.load %arg5[%c0_74, %c0_75] : memref<1x128xf32, #tpu.memory_space<vmem>>, vector<1x128xf32>
    %75 = vector.broadcast %74 : vector<1x128xf32> to vector<16x128xf32>
    %76 = arith.addf %73, %75 : vector<16x128xf32>
    %cst_76 = arith.constant 0.000000e+00 : f32
    %77 = vector.broadcast %cst_76 : f32 to vector<16x128xf32>
    %78 = arith.maximumf %76, %77 : vector<16x128xf32>
    %79 = arith.truncf %78 : vector<16x128xf32> to vector<16x128xbf16>
    %80 = tpu.concatenate %52, %61, %70, %79 in 1 : vector<16x128xbf16>, vector<16x128xbf16>, vector<16x128xbf16>, vector<16x128xbf16> -> vector<16x512xbf16>
    %81 = vector.shape_cast %80 : vector<16x512xbf16> to vector<1x16x512xbf16>
    %cst_77 = arith.constant 0.000000e+00 : bf16
    %82 = vector.broadcast %cst_77 : bf16 to vector<1x2x512xbf16>
    %c0_78 = arith.constant 0 : index
    %c0_79 = arith.constant 0 : index
    %c0_80 = arith.constant 0 : index
    %83 = vector.load %arg10[%c0_78, %c0_79, %c0_80] : memref<1x16x2560xbf16, #tpu.memory_space<vmem>>, vector<1x2x512xbf16>
    tpu.vector_store %arg10[%c0_78, %c0_79, %c0_80], %82 {strides = array<i32>} : memref<1x16x2560xbf16, #tpu.memory_space<vmem>>, vector<1x2x512xbf16>,
    %84 = vector.extract_strided_slice %81 {offsets = [0, 0, 0], sizes = [1, 14, 512], strides = [1, 1, 1]} : vector<1x16x512xbf16> to vector<1x14x512xbf16>
    %c0_81 = arith.constant 0 : index
    %c2_82 = arith.constant 2 : index
    %c0_83 = arith.constant 0 : index
    %85 = vector.load %arg10[%c0_81, %c2_82, %c0_83] : memref<1x16x2560xbf16, #tpu.memory_space<vmem>>, vector<1x14x512xbf16>
    tpu.vector_store %arg10[%c0_81, %c2_82, %c0_83], %84 {strides = array<i32>} : memref<1x16x2560xbf16, #tpu.memory_space<vmem>>, vector<1x14x512xbf16>,
    %cst_84 = arith.constant 0.000000e+00 : bf16
    %86 = vector.broadcast %cst_84 : bf16 to vector<1x1x512xbf16>
    %c0_85 = arith.constant 0 : index
    %c0_86 = arith.constant 0 : index
    %c512 = arith.constant 512 : index
    %87 = vector.load %arg10[%c0_85, %c0_86, %c512] : memref<1x16x2560xbf16, #tpu.memory_space<vmem>>, vector<1x1x512xbf16>
    tpu.vector_store %arg10[%c0_85, %c0_86, %c512], %86 {strides = array<i32>} : memref<1x16x2560xbf16, #tpu.memory_space<vmem>>, vector<1x1x512xbf16>,
    %88 = vector.extract_strided_slice %81 {offsets = [0, 0, 0], sizes = [1, 15, 512], strides = [1, 1, 1]} : vector<1x16x512xbf16> to vector<1x15x512xbf16>
    %c0_87 = arith.constant 0 : index
    %c1_88 = arith.constant 1 : index
    %c512_89 = arith.constant 512 : index
    %89 = vector.load %arg10[%c0_87, %c1_88, %c512_89] : memref<1x16x2560xbf16, #tpu.memory_space<vmem>>, vector<1x15x512xbf16>
    tpu.vector_store %arg10[%c0_87, %c1_88, %c512_89], %88 {strides = array<i32>} : memref<1x16x2560xbf16, #tpu.memory_space<vmem>>, vector<1x15x512xbf16>,
    %c0_90 = arith.constant 0 : index
    %c0_91 = arith.constant 0 : index
    %c1024 = arith.constant 1024 : index
    %90 = vector.load %arg10[%c0_90, %c0_91, %c1024] : memref<1x16x2560xbf16, #tpu.memory_space<vmem>>, vector<1x16x512xbf16>
    tpu.vector_store %arg10[%c0_90, %c0_91, %c1024], %81 {strides = array<i32>} : memref<1x16x2560xbf16, #tpu.memory_space<vmem>>, vector<1x16x512xbf16>,
    %cst_92 = arith.constant 0.000000e+00 : bf16
    %91 = vector.broadcast %cst_92 : bf16 to vector<1x1x512xbf16>
    %c0_93 = arith.constant 0 : index
    %c15_94 = arith.constant 15 : index
    %c1536 = arith.constant 1536 : index
    %92 = vector.load %arg10[%c0_93, %c15_94, %c1536] : memref<1x16x2560xbf16, #tpu.memory_space<vmem>>, vector<1x1x512xbf16>
    tpu.vector_store %arg10[%c0_93, %c15_94, %c1536], %91 {strides = array<i32>} : memref<1x16x2560xbf16, #tpu.memory_space<vmem>>, vector<1x1x512xbf16>,
    %93 = vector.extract_strided_slice %81 {offsets = [0, 1, 0], sizes = [1, 15, 512], strides = [1, 1, 1]} : vector<1x16x512xbf16> to vector<1x15x512xbf16>
    %c0_95 = arith.constant 0 : index
    %c0_96 = arith.constant 0 : index
    %c1536_97 = arith.constant 1536 : index
    %94 = vector.load %arg10[%c0_95, %c0_96, %c1536_97] : memref<1x16x2560xbf16, #tpu.memory_space<vmem>>, vector<1x15x512xbf16>
    tpu.vector_store %arg10[%c0_95, %c0_96, %c1536_97], %93 {strides = array<i32>} : memref<1x16x2560xbf16, #tpu.memory_space<vmem>>, vector<1x15x512xbf16>,
    %cst_98 = arith.constant 0.000000e+00 : bf16
    %95 = vector.broadcast %cst_98 : bf16 to vector<1x2x512xbf16>
    %c0_99 = arith.constant 0 : index
    %c14_100 = arith.constant 14 : index
    %c2048 = arith.constant 2048 : index
    %96 = vector.load %arg10[%c0_99, %c14_100, %c2048] : memref<1x16x2560xbf16, #tpu.memory_space<vmem>>, vector<1x2x512xbf16>
    tpu.vector_store %arg10[%c0_99, %c14_100, %c2048], %95 {strides = array<i32>} : memref<1x16x2560xbf16, #tpu.memory_space<vmem>>, vector<1x2x512xbf16>,
    %97 = vector.extract_strided_slice %81 {offsets = [0, 2, 0], sizes = [1, 14, 512], strides = [1, 1, 1]} : vector<1x16x512xbf16> to vector<1x14x512xbf16>
    %c0_101 = arith.constant 0 : index
    %c0_102 = arith.constant 0 : index
    %c2048_103 = arith.constant 2048 : index
    %98 = vector.load %arg10[%c0_101, %c0_102, %c2048_103] : memref<1x16x2560xbf16, #tpu.memory_space<vmem>>, vector<1x14x512xbf16>
    tpu.vector_store %arg10[%c0_101, %c0_102, %c2048_103], %97 {strides = array<i32>} : memref<1x16x2560xbf16, #tpu.memory_space<vmem>>, vector<1x14x512xbf16>,
    %c0_104 = arith.constant 0 : index
    %c0_105 = arith.constant 0 : index
    %c0_106 = arith.constant 0 : index
    %99 = vector.load %arg10[%c0_104, %c0_105, %c0_106] : memref<1x16x2560xbf16, #tpu.memory_space<vmem>>, vector<1x16x2560xbf16>
    %100 = vector.shape_cast %99 : vector<1x16x2560xbf16> to vector<16x2560xbf16>
    %c0_107 = arith.constant 0 : index
    %c0_108 = arith.constant 0 : index
    %101 = vector.load %arg6[%c0_107, %c0_108] : memref<2560x128xbf16, #tpu.memory_space<vmem>>, vector<2560x128xbf16>
    %cst_109 = arith.constant dense<0.000000e+00> : vector<16x128xf32>
    %102 = tpu.matmul %100, %101, %cst_109 {dimension_numbers = #tpu.dot_dimension_numbers<[1], [0], [0], [1], [0, 0, 1, 1], [], []>} : vector<16x2560xbf16>, vector<2560x128xbf16>, vector<16x128xf32> -> vector<16x128xf32>
    %103 = vector.shape_cast %102 : vector<16x128xf32> to vector<1x16x128xf32>
    %c0_110 = arith.constant 0 : index
    %c0_111 = arith.constant 0 : index
    %104 = vector.load %arg7[%c0_110, %c0_111] : memref<16x128xf32, #tpu.memory_space<vmem>>, vector<16x128xf32>
    %105 = vector.shape_cast %104 : vector<16x128xf32> to vector<1x16x128xf32>
    %106 = arith.addf %103, %105 : vector<1x16x128xf32>
    %c0_112 = arith.constant 0 : index
    %c0_113 = arith.constant 0 : index
    %c0_114 = arith.constant 0 : index
    %107 = vector.load %arg8[%c0_112, %c0_113, %c0_114] : memref<1x16x128xf32, #tpu.memory_space<vmem>>, vector<1x16x128xf32>
    tpu.vector_store %arg8[%c0_112, %c0_113, %c0_114], %106 {strides = array<i32>} : memref<1x16x128xf32, #tpu.memory_space<vmem>>, vector<1x16x128xf32>,
    return
  }
  func.func @transform_0(%arg0: i32) -> (i32, i32, i32) {
    %c0_i32 = arith.constant 0 : i32
    %c0_i32_0 = arith.constant 0 : i32
    %c0_i32_1 = arith.constant 0 : i32
    return %arg0, %c0_i32, %c0_i32_0 : i32, i32, i32
  }
  func.func @transform_1(%arg0: i32) -> (i32, i32) {
    %c0_i32 = arith.constant 0 : i32
    %c0_i32_0 = arith.constant 0 : i32
    %c0_i32_1 = arith.constant 0 : i32
    return %c0_i32, %c0_i32_0 : i32, i32
  }
  func.func @transform_2(%arg0: i32) -> (i32, i32) {
    %c0_i32 = arith.constant 0 : i32
    %c0_i32_0 = arith.constant 0 : i32
    %c0_i32_1 = arith.constant 0 : i32
    return %c0_i32, %c0_i32_0 : i32, i32
  }
  func.func @transform_3(%arg0: i32) -> (i32, i32) {
    %c0_i32 = arith.constant 0 : i32
    %c0_i32_0 = arith.constant 0 : i32
    %c0_i32_1 = arith.constant 0 : i32
    return %c0_i32, %c0_i32_0 : i32, i32
  }
  func.func @transform_4(%arg0: i32) -> (i32, i32) {
    %c0_i32 = arith.constant 0 : i32
    %c0_i32_0 = arith.constant 0 : i32
    %c0_i32_1 = arith.constant 0 : i32
    return %c0_i32, %c0_i32_0 : i32, i32
  }
  func.func @transform_5(%arg0: i32) -> (i32, i32) {
    %c0_i32 = arith.constant 0 : i32
    %c0_i32_0 = arith.constant 0 : i32
    %c0_i32_1 = arith.constant 0 : i32
    return %c0_i32, %c0_i32_0 : i32, i32
  }
  func.func @transform_6(%arg0: i32) -> (i32, i32) {
    %c0_i32 = arith.constant 0 : i32
    %c0_i32_0 = arith.constant 0 : i32
    %c0_i32_1 = arith.constant 0 : i32
    return %c0_i32, %c0_i32_0 : i32, i32
  }
  func.func @transform_7(%arg0: i32) -> (i32, i32, i32) {
    %c0_i32 = arith.constant 0 : i32
    %c0_i32_0 = arith.constant 0 : i32
    %c0_i32_1 = arith.constant 0 : i32
    return %arg0, %c0_i32, %c0_i32_0 : i32, i32, i32
  }
}

</mosaic_0001>

<bundles_post_ra>
// kernel: tile.13
= control target key start
LH: loop header
LB: loop body
LE: loop exit
PB: predicated region body
PF: predicated region fallthrough
CT: control target
= control target key end

     0   :  { %s28_s0 = inlined_call_operand.vmem [shape: f32[64], index: 0, kind: input, shape index: {}]   ;;  %s29_s1 = inlined_call_operand.vmem [shape: f32[16,64], index: 1, kind: output, shape index: {}]  }
   0x1   :  { %v4_v0 = vld [vmem:[%s28_s0] ss:$0 sm:$0xff] }
   0x2   :  { %5 = vst [vmem:[%s29_s1] sm:$0xff] %v4_v0  ;;  %8 = vst [vmem:[%s29_s1 + $0x8] sm:$0xff] %v4_v0 }

// kernel: tile.14
= control target key start
LH: loop header
LB: loop body
LE: loop exit
PB: predicated region body
PF: predicated region fallthrough
CT: control target
= control target key end

     0   :  { %vm3_vm0 = vcmask 523264   ;;  %vm10_vm1 = vcmask 1048064   ;;  %s116_s0 = inlined_call_operand.vmem [shape: f32[16,64], index: 0, kind: input, shape index: {}]   ;;  %s117_s1 = inlined_call_operand.vmem [shape: f32[1,1024], index: 1, kind: output, shape index: {}]  }
   0x1   :  { %v66_v0 = vld [vmem:[%s116_s0 + $0x1] ss:$2 sm:$0xff]   ;;  %v2_v1 = vld [vmem:[%s116_s0] ss:$2 sm:$0xff]   ;;  %s75_s0 = smov 64  }
   0x2   :  { %8 = vrot.lane.b32.xlu0 %v66_v0, %s75_s0  ;;  %4 = vst.msk [vmem:[#allocation0] ss:$8 sm:$0xf] %vm3_vm0, %v2_v1   ;;  %5 = vst.msk [vmem:[#allocation0] ss:$8 sm:$0xf0] %vm3_vm0, %v2_v1  }
  0x74   :  { %v9_v2 = vpop.permute.xlu0 %8  }
  0x75   :  { %11 = vst.msk [vmem:[#allocation0] ss:$8 sm:$0xf] %vm10_vm1, %v9_v2   ;;  %12 = vst.msk [vmem:[#allocation0] ss:$8 sm:$0xf0] %vm10_vm1, %v9_v2  }
  0x7c   :  { %v16_v3 = vld [vmem:[#allocation0] sm:$0x1]  ;;  %v20_v4 = vld [vmem:[#allocation0 + $0x8] sm:$0x1]  ;;  %v25_v5 = vld [vmem:[#allocation0 + $0x10] sm:$0x1] }
  0x7d   :  { %18 = vst [vmem:[%s117_s1] sm:$0x1] %v16_v3  ;;  %67 = vst [vmem:[%s117_s1 + $0x1] sm:$0x1] %v20_v4  ;;  %v31_v6 = vld [vmem:[#allocation0 + $0x18] sm:$0x1] }
  0x7e   :  { %68 = vst [vmem:[%s117_s1 + $0x2] sm:$0x1] %v25_v5  ;;  %v37_v7 = vld [vmem:[#allocation0 + $0x20] sm:$0x1]  ;;  %v43_v8 = vld [vmem:[#allocation0 + $0x28] sm:$0x1] }
  0x7f   :  { %69 = vst [vmem:[%s117_s1 + $0x3] sm:$0x1] %v31_v6  ;;  %70 = vst [vmem:[%s117_s1 + $0x4] sm:$0x1] %v37_v7  ;;  %v49_v9 = vld [vmem:[#allocation0 + $0x30] sm:$0x1] }
  0x80   :  { %71 = vst [vmem:[%s117_s1 + $0x5] sm:$0x1] %v43_v8  ;;  %v55_v10 = vld [vmem:[#allocation0 + $0x38] sm:$0x1]  ;;  %72 = vst [vmem:[%s117_s1 + $0x6] sm:$0x1] %v49_v9 }
  0x81   :  { %73 = vst [vmem:[%s117_s1 + $0x7] sm:$0x1] %v55_v10 }

// kernel: tile.18
= control target key start
LH: loop header
LB: loop body
LE: loop exit
PB: predicated region body
PF: predicated region fallthrough
CT: control target
= control target key end

     0   :  { %s22_s0 = inlined_call_operand.vmem [shape: f32[32], index: 0, kind: input, shape index: {}]   ;;  %s23_s1 = inlined_call_operand.vmem [shape: f32[4,32], index: 1, kind: output, shape index: {}]  }
   0x1   :  { %v4_v0 = vld [vmem:[%s22_s0] ss:$0 sm:$0xff] }
   0x2   :  { %5 = vst [vmem:[%s23_s1] sm:$0xf] %v4_v0 }

// kernel: tile.19
= control target key start
LH: loop header
LB: loop body
LE: loop exit
PB: predicated region body
PF: predicated region fallthrough
CT: control target
= control target key end

     0   :  { %vm7_vm0 = vcmask 261120   ;;  %s37_s8 = smov 32   ;;  %s38_s9 = smov 64   ;;  %vm13_vm1 = vcmask 1048320   ;;  %vm19_vm2 = vcmask 785920   ;;  %vm25_vm3 = vcmask 523520   ;;  %s55_s0 = inlined_call_operand.vmem [shape: f32[4,32], index: 0, kind: input, shape index: {}]   ;;  %s56_s1 = inlined_call_operand.vmem [shape: f32[1,128], index: 1, kind: output, shape index: {}]  }
   0x1   :  { %v4_v0 = vld [vmem:[%s55_s0] sm:$0xf]  ;;  %s36_s0 = smov 96  }
   0x2   :  { %5 = vst [vmem:[#allocation1] sm:$0xf] %v4_v0 }
   0x9   :  { %v10_v1 = vld [vmem:[#allocation1 + $0x3] sm:$0x1]   ;;  %v22_v2 = vld [vmem:[#allocation1 + $0x1] sm:$0x1]   ;;  %v6_v3 = vld [vmem:[#allocation1] sm:$0x1]  }
   0xa   :  { %11 = vrot.lane.b32.xlu0 %v10_v1, %s36_s0  ;;  %23 = vrot.lane.b32.xlu1 %v22_v2, %s37_s8  ;;  %v16_v4 = vld [vmem:[#allocation1 + $0x2] sm:$0x1]   ;;  %8 = vst.msk [vmem:[#allocation0] sm:$0x1] %vm7_vm0, %v6_v3  }
   0xe   :  { %17 = vrot.lane.b32.xlu0 %v16_v4, %s38_s9 }
  0x7c   :  { %v12_v5 = vpop.permute.xlu0 %11   ;;  %v24_v6 = vpop.permute.xlu1 %23  }
  0x7d   :  { %14 = vst.msk [vmem:[#allocation0] sm:$0x1] %vm13_vm1, %v12_v5  }
  0x80   :  { %v18_v7 = vpop.permute.xlu0 %17  }
  0x81   :  { %20 = vst.msk [vmem:[#allocation0] sm:$0x1] %vm19_vm2, %v18_v7  }
  0x82   :  { %26 = vst.msk [vmem:[#allocation0] sm:$0x1] %vm25_vm3, %v24_v6  }
  0x89   :  { %v30_v8 = vld [vmem:[#allocation0] sm:$0x1] }
  0x8a   :  { %32 = vst [vmem:[%s56_s1] sm:$0x1] %v30_v8 }

// kernel: srcnn_forward.1
= control target key start
LH: loop header
LB: loop body
LE: loop exit
PB: predicated region body
PF: predicated region fallthrough
CT: control target
= control target key end

     0   :  { %s4116_s24 = smov 0   ;;  %s5182_s0 = inlined_call_operand.vmem [shape: bf16[2,16,16], index: 0, kind: input, shape index: {}]   ;;  %s5183_s1 = inlined_call_operand.vmem [shape: bf16[144,1024], index: 1, kind: input, shape index: {}]   ;;  %s5184_s2 = inlined_call_operand.vmem [shape: f32[1,1024], index: 2, kind: input, shape index: {}]   ;;  %s5185_s3 = inlined_call_operand.vmem [shape: bf16[256,128], index: 3, kind: input, shape index: {}]   ;;  %s5186_s4 = inlined_call_operand.vmem [shape: f32[1,128], index: 4, kind: input, shape index: {}]   ;;  %s5187_s5 = inlined_call_operand.vmem [shape: bf16[2560,128], index: 5, kind: input, shape index: {}]   ;;  %s5188_s6 = inlined_call_operand.vmem [shape: f32[16,128], index: 6, kind: input, shape index: {}]   ;;  %s5189_s7 = inlined_call_operand.vmem [shape: f32[2,16,128], index: 7, kind: output, shape index: {}]  }
   0x1 LB: > { %s3292_s25 = sadd.s32 4294967295, %s4066_s24   ;;  %p3296_p0 = scmp.ge.s32.totalorder %s4066_s24, 1  ;;  %s4066_s24 = sphi %s4116_s24, %s17_s24  }
   0x2   : > { %p237_p1 = scmp.lt.s32.totalorder %s4066_s24, 3 }
   0x4   : > { %p238_p2 = pnand %p3296_p0, %p237_p1 }
   0x5   : > { %p269_p3 = scmp.lt.s32.totalorder (!%p238_p2), %s3292_s25, 1  ;;  %vm282_vm0 = vcmask (!%p238_p2), 123904   ;;  %v4068_v0 = vmov (!%p238_p2), 0   ;;  %vm293_vm1 = vcmask (!%p238_p2), 255104   ;;  %vm294_vm2 = vsmask.f32 (!%p238_p2), 1280 }
   0x6   : > { %241 = sbr.rel (%p238_p2) target bundleno = 1041 (0x411), region = 48  ;;  %283 = vst.msk [vmem:[#allocation2] sm:$0x3] (!%p238_p2), %vm282_vm0, %v4068_v0  ;;  %1382 = vst [vmem:[#allocation3] sm:$0x1] (!%p238_p2), %v4068_v0  ;;  %vm291_vm4 = vcmask (!%p238_p2), 130050  }
   0x7   : > { %1383 = vst [vmem:[#allocation3 + $0x8] sm:$0x1] (!%p238_p2), %v4068_v0  ;;  %1384 = vst [vmem:[#allocation3 + $0x10] sm:$0x1] (!%p238_p2), %v4068_v0  ;;  %vm316_vm5 = vcmask (!%p238_p2), 385280   ;;  %vm324_vm6 = vcmask (!%p238_p2), 516480  }
   0x8   : > { %1385 = vst [vmem:[#allocation3 + $0x18] sm:$0x1] (!%p238_p2), %v4068_v0  ;;  %1505 = vst [vmem:[#allocation3 + $0x80] sm:$0x80] (!%p238_p2), %v4068_v0  ;;  %vm325_vm7 = vsmask.f32 (!%p238_p2), 256 }
   0x9   : > { %1506 = vst [vmem:[#allocation3 + $0x88] sm:$0x80] (!%p238_p2), %v4068_v0  ;;  %1507 = vst [vmem:[#allocation3 + $0x90] sm:$0x80] (!%p238_p2), %v4068_v0  ;;  %s4069_s30 = smov (!%p238_p2), 16   ;;  %s4070_s8 = smov (!%p238_p2), 48  }
   0xa   : > { %1508 = vst [vmem:[#allocation3 + $0x98] sm:$0x80] (!%p238_p2), %v4068_v0  ;;  %vm295_vm3 = vmand (!%p238_p2), %vm293_vm1, %vm294_vm2  ;;  %vm1466_vm8 = vcmask (!%p238_p2), 1047559   ;;  %vm347_vm10 = vsmask.f32 (!%p238_p2), 7966  ;;  %s4071_s9 = smov (!%p238_p2), 32  }
   0xb   : > { %vm4147_vm9 = vmand (!%p238_p2), %vm324_vm6, %vm325_vm7  ;;  %v1468_v15 = vld [vmem:[#allocation3 + $0x60] sm:$0x80] (!%p238_p2)  ;;  %v1471_v16 = vld [vmem:[#allocation3 + $0x68] sm:$0x80] (!%p238_p2)  ;;  %s4072_s10 = smov (!%p238_p2), 64   ;;  %s4073_s19 = smov (!%p238_p2), 80  }
   0xc   : > { %vm4152_vm11 = vmand (!%p238_p2), %vm1466_vm8, %vm347_vm10  ;;  %v1474_v20 = vld [vmem:[#allocation3 + $0x70] sm:$0x80] (!%p238_p2)  ;;  %v1477_v21 = vld [vmem:[#allocation3 + $0x78] sm:$0x80] (!%p238_p2)  ;;  %s4074_s20 = smov (!%p238_p2), 96   ;;  %s4075_s12 = smov (!%p238_p2), 112  }
   0xd   : > { %s5201_s25 = smov (!%p269_p3, %s3292_s25), 1  ;;  %v296_v4 = vld [vmem:[#allocation2] sm:$0x3]  ;;  %v1469_v22 = vsel %vm4152_vm11, 0, %v1468_v15  ;;  %v1472_v23 = vsel %vm4152_vm11, 0, %v1471_v16  ;;  %v1475_v24 = vsel %vm4152_vm11, 0, %v1474_v20 }
   0xe   : > { %s3557_s26 = sshll.u32 %s5201_s25, 3  ;;  %v297_v5 = vsel %vm295_vm3, 0, %v296_v4  ;;  %v1478_v25 = vsel %vm4152_vm11, 0, %v1477_v21  ;;  %1470 = vst [vmem:[#allocation3 + $0x60] sm:$0x80] %v1469_v22  ;;  %v397_v30 = vld [vmem:[%s5183_s1] sm:$0xff] }
   0xf   : > { %s273_s29 = scalar_lea.vmem %s5182_s0, %s3557_s26  ;;  %298 = vst [vmem:[#allocation2] sm:$0x3] %v297_v5  ;;  %1473 = vst [vmem:[#allocation3 + $0x68] sm:$0x80] %v1472_v23  ;;  %v401_v31 = vld [vmem:[%s5183_s1 + $0x20] sm:$0xff]  ;;  %v398_v32 = vld [vmem:[%s5183_s1 + $0x8] sm:$0xff] }
  0x10   : > { %v4139_v1 = vld [vmem:[%s273_s29] sm:$0xff]   ;;  %317 = vst.msk [vmem:[#allocation2] sm:$0x1] %vm316_vm5, %v4068_v0  ;;  %1476 = vst [vmem:[#allocation3 + $0x70] sm:$0x80] %v1475_v24  ;;  %v3303_v34 = vcombine.high %v397_v30, %v401_v31  ;;  %v402_v35 = vld [vmem:[%s5183_s1 + $0x28] sm:$0xff]  ;;  %v3302_v37 = vcombine.low %v397_v30, %v401_v31 }
  0x11   : > { %v300_v2 = vshrl.u32 %v4139_v1, 16  ;;  %v303_v3 = vshll.u32 %v4139_v1, 16  ;;  %v289_v6 = vrot.slane %v4139_v1, 6  ;;  %v318_v12 = vrot.slane %v4139_v1, 7  ;;  %1479 = vst [vmem:[#allocation3 + $0x78] sm:$0x80] %v1478_v25 }
  0x12   : > { %v365_v27 = vrot.slane %v4139_v1, 1  ;;  %v3305_v36 = vcombine.high %v398_v32, %v402_v35  ;;  %v3304_v38 = vcombine.low %v398_v32, %v402_v35  ;;  %875 = vmatprep.subr.bf16.mxu0 %v3303_v34  ;;  %v405_v39 = vld [vmem:[%s5183_s1 + $0x40] sm:$0xff]  ;;  %v406_v41 = vld [vmem:[%s5183_s1 + $0x48] sm:$0xff]  ;;  %v391_v30 = vrot.slane %v4139_v1, 2 }
  0x13   : > { %v302_v7 = vrot.slane %v300_v2, 6  ;;  %v305_v8 = vrot.slane %v303_v3, 7  ;;  %v330_v9 = vrot.slane %v300_v2, 7  ;;  %292 = vst.msk [vmem:[#allocation2] sm:$0xfc] %vm291_vm4, %v289_v6  ;;  %v352_v13 = vrot.slane %v303_v3, 1  ;;  %876 = vmatpush1.bf16.msra.mxu0 %v3302_v37 }
  0x14   : > { %v377_v17 = vrot.slane %v300_v2, 1  ;;  %v378_v18 = vrot.slane %v303_v3, 2  ;;  %918 = vmatprep.subr.bf16.mxu1 %v3305_v36  ;;  %v409_v40 = vld [vmem:[%s5183_s1 + $0x60] sm:$0xff]  ;;  %v410_v43 = vld [vmem:[%s5183_s1 + $0x68] sm:$0xff]  ;;  %vm389_vm12 = vcmask 130054   ;;  %vm393_vm13 = vcmask 128000  }
  0x15   : > { %v306_v10 = vor.u32 %v305_v8, %v302_v7  ;;  %v331_v11 = vor.u32 %v330_v9, %v303_v3  ;;  %v353_v26 = vor.u32 %v352_v13, %v300_v2  ;;  %919 = vmatpush1.bf16.msra.mxu1 %v3304_v38  ;;  %v3311_v42 = vcombine.high %v405_v39, %v409_v40  ;;  %v413_v45 = vld [vmem:[%s5183_s1 + $0x80] sm:$0xff]  ;;  %v414_v50 = vld [vmem:[%s5183_s1 + $0x88] sm:$0xff] }
  0x16   : > { %v379_v33 = vor.u32 %v378_v18, %v377_v17  ;;  %v3310_v44 = vcombine.low %v405_v39, %v409_v40  ;;  %v417_v46 = vld [vmem:[%s5183_s1 + $0xa0] sm:$0xff]  ;;  %v3313_v47 = vcombine.high %v406_v41, %v410_v43  ;;  %v3312_v48 = vcombine.low %v406_v41, %v410_v43  ;;  %v418_v51 = vld [vmem:[%s5183_s1 + $0xa8] sm:$0xff]  ;;  %390 = vst.msk [vmem:[#allocation2 + $0x8] sm:$0xc0] %vm389_vm12, %v4068_v0  ;;  %v4281_v39 = vld [vmem:[%s5183_s1 + $0x10] sm:$0xff] }
  0x17   : > { %307 = vrot.lane.b32.xlu0 %v306_v10, %s4069_s30  ;;  %332 = vrot.lane.b32.xlu1 %v331_v11, %s4070_s8  ;;  %v327_v28 = vld [vmem:[#allocation2] sm:$0x1]  ;;  %v3319_v49 = vcombine.high %v413_v45, %v417_v46  ;;  %v3321_v52 = vcombine.high %v414_v50, %v418_v51  ;;  %v3318_v53 = vcombine.low %v413_v45, %v417_v46  ;;  %v422_v57 = vld [vmem:[%s5183_s1 + $0xc8] sm:$0xff]  ;;  %vm871_vm14 = vcmask 130048   ;;  %v4286_v40 = vld [vmem:[%s5183_s1 + $0x30] sm:$0xff] }
  0x18   : > { %v328_v29 = vsel %vm4147_vm9, 0, %v327_v28  ;;  %877 = vmatprep.subr.bf16.mxu0 %v3311_v42  ;;  %920 = vmatprep.subr.bf16.mxu1 %v3313_v47  ;;  %v3320_v54 = vcombine.low %v414_v50, %v418_v51  ;;  %v421_v55 = vld [vmem:[%s5183_s1 + $0xc0] sm:$0xff]  ;;  %v426_v58 = vld [vmem:[%s5183_s1 + $0xe8] sm:$0xff]  ;;  %394 = vst.msk [vmem:[#allocation2 + $0x8] sm:$0x3f] %vm393_vm13, %v391_v30  ;;  %v3306_v43 = vcombine.low %v4281_v39, %v4286_v40  ;;  %v4295_v45 = vld [vmem:[%s5183_s1 + $0x18] sm:$0xff] }
  0x19   : > { %329 = vst [vmem:[#allocation2] sm:$0x1] %v328_v29  ;;  %878 = vmatpush1.bf16.msra.mxu0 %v3310_v44  ;;  %921 = vmatpush1.bf16.msra.mxu1 %v3312_v48  ;;  %v425_v56 = vld [vmem:[%s5183_s1 + $0xe0] sm:$0xff]  ;;  %v3329_v60 = vcombine.high %v422_v57, %v426_v58  ;;  %v3328_v62 = vcombine.low %v422_v57, %v426_v58  ;;  %v430_v3 = vld [vmem:[%s5183_s1 + $0x108] sm:$0xff]  ;;  %v4300_v46 = vld [vmem:[%s5183_s1 + $0x38] sm:$0xff]  ;;  %vm310_vm15 = vcmask 261249  }
  0x1a   : > { %879 = vmatprep.subr.bf16.mxu0 %v3319_v49  ;;  %922 = vmatprep.subr.bf16.mxu1 %v3321_v52  ;;  %v3327_v59 = vcombine.high %v421_v55, %v425_v56  ;;  %v3326_v61 = vcombine.low %v421_v55, %v425_v56  ;;  %v429_v63 = vld [vmem:[%s5183_s1 + $0x100] sm:$0xff]  ;;  %v434_v5 = vld [vmem:[%s5183_s1 + $0x128] sm:$0xff]  ;;  %v3307_v44 = vcombine.high %v4281_v39, %v4286_v40  ;;  %vm311_vm0 = vsmask.f32 7942  ;;  %v435_v30 = vld [vmem:[%s5183_s1 + $0x130] sm:$0xff] }
  0x1b   : > { %319 = vrot.lane.b32.xlu0 %v318_v12, %s4071_s9  ;;  %341 = vrot.lane.b32.xlu1 %v4139_v1, %s4072_s10  ;;  %v433_v2 = vld [vmem:[%s5183_s1 + $0x120] sm:$0xff]  ;;  %v3337_v6 = vcombine.high %v430_v3, %v434_v5  ;;  %v3336_v8 = vcombine.low %v430_v3, %v434_v5  ;;  %v438_v11 = vld [vmem:[%s5183_s1 + $0x148] sm:$0xff]  ;;  %v3308_v47 = vcombine.low %v4295_v45, %v4300_v46  ;;  %vm312_vm1 = vmand %vm310_vm15, %vm311_vm0  ;;  %vm335_vm2 = vcmask 523648   ;;  %s3558_s10 = sshll.u32 %s5201_s25, 4 }
  0x1c   : > { %v3335_v4 = vcombine.high %v429_v63, %v433_v2  ;;  %v3334_v7 = vcombine.low %v429_v63, %v433_v2  ;;  %v437_v9 = vld [vmem:[%s5183_s1 + $0x140] sm:$0xff]  ;;  %v442_v13 = vld [vmem:[%s5183_s1 + $0x168] sm:$0xff]  ;;  %v3309_v48 = vcombine.high %v4295_v45, %v4300_v46  ;;  %vm336_vm3 = vsmask.f32 7938  ;;  %v444_v39 = vld [vmem:[%s5183_s1 + $0x178] sm:$0xff]  ;;  %s278_s15 = scalar_lea.vmem %s5189_s7, %s3558_s10 }
  0x1d   : > { %880 = vmatpush1.bf16.msra.mxu0 %v3318_v53  ;;  %923 = vmatpush1.bf16.msra.mxu1 %v3320_v54  ;;  %v441_v10 = vld [vmem:[%s5183_s1 + $0x160] sm:$0xff]  ;;  %v3345_v14 = vcombine.high %v438_v11, %v442_v13  ;;  %v3344_v16 = vcombine.low %v438_v11, %v442_v13  ;;  %v446_v19 = vld [vmem:[%s5183_s1 + $0x188] sm:$0xff]  ;;  %vm322_vm4 = vcmask 392449   ;;  %vm346_vm5 = vcmask 786055   ;;  %vm337_vm6 = vmand %vm335_vm2, %vm336_vm3 }
  0x1e   : > { %881 = vmatprep.subr.bf16.mxu0 %v3327_v59  ;;  %924 = vmatprep.subr.bf16.mxu1 %v3329_v60  ;;  %v3343_v12 = vcombine.high %v437_v9, %v441_v10  ;;  %v3342_v15 = vcombine.low %v437_v9, %v441_v10  ;;  %v445_v17 = vld [vmem:[%s5183_s1 + $0x180] sm:$0xff]  ;;  %v450_v21 = vld [vmem:[%s5183_s1 + $0x1a8] sm:$0xff]  ;;  %vm344_vm8 = vcmask 654848   ;;  %vm348_vm9 = vmand %vm346_vm5, %vm347_vm10  ;;  %vm357_vm11 = vcmask 786048  }
  0x1f   : > { %354 = vrot.lane.b32.xlu0 %v353_v26, %s4073_s19  ;;  %366 = vrot.lane.b32.xlu1 %v365_v27, %s4074_s20  ;;  %v449_v18 = vld [vmem:[%s5183_s1 + $0x1a0] sm:$0xff]  ;;  %v3353_v22 = vcombine.high %v446_v19, %v450_v21  ;;  %v3352_v24 = vcombine.low %v446_v19, %v450_v21  ;;  %v454_v27 = vld [vmem:[%s5183_s1 + $0x1c8] sm:$0xff]  ;;  %vm358_vm12 = vsmask.f32 7424  ;;  %vm363_vm15 = vcmask 917255  }
  0x20   : > { %v3351_v20 = vcombine.high %v445_v17, %v449_v18  ;;  %v3350_v23 = vcombine.low %v445_v17, %v449_v18  ;;  %v453_v25 = vld [vmem:[%s5183_s1 + $0x1c0] sm:$0xff]  ;;  %v458_v29 = vld [vmem:[%s5183_s1 + $0x1e8] sm:$0xff]  ;;  %vm359_vm13 = vmand %vm357_vm11, %vm358_vm12  ;;  %vm369_vm0 = vcmask 916224   ;;  %vm371_vm10 = vcmask 1048454  }
  0x21   : > { %882 = vmatpush1.bf16.msra.mxu0 %v3326_v61  ;;  %925 = vmatpush1.bf16.msra.mxu1 %v3328_v62  ;;  %v457_v26 = vld [vmem:[%s5183_s1 + $0x1e0] sm:$0xff]  ;;  %v3361_v31 = vcombine.high %v454_v27, %v458_v29  ;;  %v462_v1 = vld [vmem:[%s5183_s1 + $0x208] sm:$0xff]  ;;  %vm384_vm5 = vsmask.f32 6400  ;;  %v412_v9 = vld [vmem:[%s5183_s1 + $0x78] sm:$0xff] }
  0x22   : > { %883 = vmatprep.subr.bf16.mxu0 %v3335_v4  ;;  %926 = vmatprep.subr.bf16.mxu1 %v3337_v6  ;;  %v3359_v28 = vcombine.high %v453_v25, %v457_v26  ;;  %v3358_v32 = vcombine.low %v453_v25, %v457_v26  ;;  %v461_v34 = vld [vmem:[%s5183_s1 + $0x200] sm:$0xff]  ;;  %v466_v37 = vld [vmem:[%s5183_s1 + $0x228] sm:$0xff]  ;;  %v419_v13 = vld [vmem:[%s5183_s1 + $0xb0] sm:$0xff] }
  0x23   : > { %380 = vrot.lane.b32.xlu0 %v379_v33, %s4075_s12  ;;  %v3360_v33 = vcombine.low %v454_v27, %v458_v29  ;;  %v465_v35 = vld [vmem:[%s5183_s1 + $0x220] sm:$0xff]  ;;  %v3369_v41 = vcombine.high %v462_v1, %v466_v37  ;;  %v3368_v42 = vcombine.low %v462_v1, %v466_v37  ;;  %v4306_v49 = vld [vmem:[#allocation2 + $0x8] sm:$0xff]  ;;  %v423_v21 = vld [vmem:[%s5183_s1 + $0xd0] sm:$0xff] }
  0x24   : > { %v3367_v36 = vcombine.high %v461_v34, %v465_v35  ;;  %v3366_v38 = vcombine.low %v461_v34, %v465_v35  ;;  %3374 = vmatprep.mubr.msk.bf16.mxu0 %vm871_vm14, %v4306_v49  ;;  %3375 = vmatprep.mubr.msk.bf16.mxu1 %vm871_vm14, %v4306_v49  ;;  %v313_v50 = vld [vmem:[#allocation2] sm:$0xfe]  ;;  %v431_v29 = vld [vmem:[%s5183_s1 + $0x110] sm:$0xff]  ;;  %v448_v46 = vld [vmem:[%s5183_s1 + $0x198] sm:$0xff] }
  0x25   : > { %884 = vmatpush1.bf16.msra.mxu0 %v3334_v7  ;;  %927 = vmatpush1.bf16.msra.mxu1 %v3336_v8  ;;  %v407_v7 = vld [vmem:[%s5183_s1 + $0x50] sm:$0xff]  ;;  %v408_v8 = vld [vmem:[%s5183_s1 + $0x58] sm:$0xff]  ;;  %v3339_v35 = vcombine.high %v431_v29, %v435_v30  ;;  %v3338_v40 = vcombine.low %v431_v29, %v435_v30 }
  0x26   : > { %885 = vmatprep.subr.bf16.mxu0 %v3343_v12  ;;  %928 = vmatprep.subr.bf16.mxu1 %v3345_v14  ;;  %v3317_v11 = vcombine.high %v408_v8, %v412_v9  ;;  %v415_v12 = vld [vmem:[%s5183_s1 + $0x90] sm:$0xff]  ;;  %v3316_v18 = vcombine.low %v408_v8, %v412_v9  ;;  %v4432_v8 = vld [vmem:[%s5185_s3] sm:$0xff]   ;;  %v4437_v9 = vld [vmem:[%s5185_s3 + $0x48] sm:$0xff]  }
  0x27   : > { %v3323_v19 = vcombine.high %v415_v12, %v419_v13  ;;  %v3322_v25 = vcombine.low %v415_v12, %v419_v13  ;;  %v443_v37 = vld [vmem:[%s5183_s1 + $0x170] sm:$0xff]  ;;  %v4467_v13 = vld [vmem:[%s5185_s3 + $0x58] sm:$0xff]  }
  0x28   : > { %v451_v45 = vld [vmem:[%s5183_s1 + $0x1b0] sm:$0xff] }
  0x29   : > { %886 = vmatpush1.bf16.msra.mxu0 %v3342_v15  ;;  %929 = vmatpush1.bf16.msra.mxu1 %v3344_v16  ;;  %v416_v15 = vld [vmem:[%s5183_s1 + $0x98] sm:$0xff]  ;;  %v4460_v12 = vld [vmem:[%s5185_s3 + $0x10] sm:$0xff]  }
  0x2a   : > { %887 = vmatprep.subr.bf16.mxu0 %v3351_v20  ;;  %930 = vmatprep.subr.bf16.mxu1 %v3353_v22  ;;  %v420_v16 = vld [vmem:[%s5183_s1 + $0xb8] sm:$0xff]  ;;  %v427_v22 = vld [vmem:[%s5183_s1 + $0xf0] sm:$0xff] }
  0x2b   : > { %v3325_v20 = vcombine.high %v416_v15, %v420_v16  ;;  %v3324_v26 = vcombine.low %v416_v15, %v420_v16  ;;  %v3331_v27 = vcombine.high %v423_v21, %v427_v22  ;;  %v4481_v15 = vld [vmem:[%s5185_s3 + $0x60] sm:$0xff]  }
  0x2c   : > { %v4488_v16 = vld [vmem:[%s5185_s3 + $0x20] sm:$0xff]  }
  0x2d   : > { %888 = vmatpush1.bf16.msra.mxu0 %v3350_v23  ;;  %931 = vmatpush1.bf16.msra.mxu1 %v3352_v24  ;;  %v424_v23 = vld [vmem:[%s5183_s1 + $0xd8] sm:$0xff] }
  0x2e   : > { %889 = vmatprep.subr.bf16.mxu0 %v3359_v28  ;;  %932 = vmatprep.subr.bf16.mxu1 %v3361_v31  ;;  %v428_v24 = vld [vmem:[%s5183_s1 + $0xf8] sm:$0xff] }
  0x2f   : > { %v3333_v28 = vcombine.high %v424_v23, %v428_v24  ;;  %v432_v31 = vld [vmem:[%s5183_s1 + $0x118] sm:$0xff]  ;;  %v3332_v34 = vcombine.low %v424_v23, %v428_v24  ;;  %v471_v23 = vlaneseq }
  0x31   : > { %890 = vmatpush1.bf16.msra.mxu0 %v3358_v32  ;;  %933 = vmatpush1.bf16.msra.mxu1 %v3360_v33  ;;  %v436_v32 = vld [vmem:[%s5183_s1 + $0x138] sm:$0xff]  ;;  %v3330_v33 = vcombine.low %v423_v21, %v427_v22  ;;  %v4536_v24 = vshrl.u32 %v471_v23, 7 }
  0x32   : > { %891 = vmatprep.subr.bf16.mxu0 %v3367_v36  ;;  %934 = vmatprep.subr.bf16.mxu1 %v3369_v41  ;;  %v3341_v1 = vcombine.high %v432_v31, %v436_v32  ;;  %v439_v36 = vld [vmem:[%s5183_s1 + $0x150] sm:$0xff]  ;;  %v3340_v41 = vcombine.low %v432_v31, %v436_v32  ;;  %v4525_v21 = vld [vmem:[%s5185_s3 + $0x78] sm:$0xff]  }
  0x33   : > { %v4530_v22 = vld [vmem:[%s5185_s3 + $0x38] sm:$0xff]   ;;  %v485_v29 = vsub.s32 3, %v4536_v24 }
  0x35   : > { %892 = vmatpush1.bf16.msra.mxu0 %v3366_v38  ;;  %935 = vmatpush1.bf16.msra.mxu1 %v3368_v42  ;;  %v440_v38 = vld [vmem:[%s5183_s1 + $0x158] sm:$0xff]  ;;  %v3347_v42 = vcombine.high %v439_v36, %v443_v37 }
  0x36   : > { %961 = vmatprep.subr.bf16.mxu0 %v3307_v44  ;;  %1004 = vmatprep.subr.bf16.mxu1 %v3309_v48  ;;  %v447_v44 = vld [vmem:[%s5183_s1 + $0x190] sm:$0xff]  ;;  %v3346_v48 = vcombine.low %v439_v36, %v443_v37 }
  0x89   : > { %v308_v51 = vpop.permute.xlu0 %307  ;;  %v333_v54 = vpop.permute.xlu1 %332 }
  0x8a   : > { %v314_v52 = vsel %vm312_vm1, %v308_v51, %v313_v50  ;;  %vm372_vm1 = vsmask.f32 7962  ;;  %v3355_v50 = vcombine.high %v447_v44, %v451_v45 }
  0x8b   : > { %315 = vst [vmem:[#allocation2] sm:$0xfe] %v314_v52  ;;  %vm373_vm2 = vmand %vm371_vm10, %vm372_vm1  ;;  %v455_v52 = vld [vmem:[%s5183_s1 + $0x1d0] sm:$0xff] }
  0x8d   : > { %v320_v53 = vpop.permute.xlu0 %319  ;;  %v342_v56 = vpop.permute.xlu1 %341 }
  0x8e   : > { %323 = vst.msk [vmem:[#allocation2] sm:$0xfe] %vm322_vm4, %v320_v53  ;;  %vm383_vm4 = vcmask 1047424   ;;  %v459_v53 = vld [vmem:[%s5183_s1 + $0x1f0] sm:$0xff] }
  0x91   : > { %v355_v60 = vpop.permute.xlu0 %354  ;;  %v367_v62 = vpop.permute.xlu1 %366 }
  0x95   : > { %v338_v55 = vld [vmem:[#allocation2] sm:$0xff]  ;;  %v381_v4 = vpop.permute.xlu0 %380 }
  0x96   : > { %v339_v57 = vsel %vm337_vm6, %v333_v54, %v338_v55  ;;  %vm385_vm6 = vmand %vm383_vm4, %vm384_vm5  ;;  %v456_v54 = vld [vmem:[%s5183_s1 + $0x1d8] sm:$0xff] }
  0x97   : > { %340 = vst [vmem:[#allocation2] sm:$0xff] %v339_v57  ;;  %v460_v55 = vld [vmem:[%s5183_s1 + $0x1f8] sm:$0xff] }
  0x98   : > { %345 = vst.msk [vmem:[#allocation2] sm:$0xff] %vm344_vm8, %v342_v56  ;;  %v3354_v56 = vcombine.low %v447_v44, %v451_v45 }
  0x9f   : > { %v349_v58 = vld [vmem:[#allocation2] sm:$0x80] }
  0xa0   : > { %v350_v59 = vsel %vm348_vm9, 0, %v349_v58  ;;  %v3363_v58 = vcombine.high %v455_v52, %v459_v53 }
  0xa1   : > { %351 = vst [vmem:[#allocation2] sm:$0x80] %v350_v59  ;;  %v3365_v59 = vcombine.high %v456_v54, %v460_v55 }
  0xa8   : > { %v360_v61 = vld [vmem:[#allocation2] sm:$0xff] }
  0xa9   : > { %v361_v63 = vsel %vm359_vm13, %v355_v60, %v360_v61  ;;  %v463_v60 = vld [vmem:[%s5183_s1 + $0x210] sm:$0xff] }
  0xaa   : > { %362 = vst [vmem:[#allocation2] sm:$0xff] %v361_v63  ;;  %v467_v61 = vld [vmem:[%s5183_s1 + $0x230] sm:$0xff]  ;;  %v468_v63 = vld [vmem:[%s5183_s1 + $0x238] sm:$0xff] }
  0xab   : > { %364 = vst.msk [vmem:[#allocation2] sm:$0x80] %vm363_vm15, %v4068_v0  ;;  %v411_v0 = vld [vmem:[%s5183_s1 + $0x70] sm:$0xff] }
  0xac   : > { %370 = vst.msk [vmem:[#allocation2] sm:$0x7f] %vm369_vm0, %v367_v62  ;;  %v3315_v10 = vcombine.high %v407_v7, %v411_v0  ;;  %v3314_v17 = vcombine.low %v407_v7, %v411_v0  ;;  %v464_v62 = vld [vmem:[%s5183_s1 + $0x218] sm:$0xff]  ;;  %v3884_v0 = vld [vmem:[%s5185_s3 + $0x40] sm:$0xff]  }
  0xad   : > { %v3372_v7 = vcombine.low %v464_v62, %v468_v63 }
  0xb3   : > { %v374_v2 = vld [vmem:[#allocation2] sm:$0xc0] }
  0xb4   : > { %v375_v3 = vsel %vm373_vm2, 0, %v374_v2  ;;  %v3362_v2 = vcombine.low %v455_v52, %v459_v53 }
  0xb5   : > { %376 = vst [vmem:[#allocation2] sm:$0xc0] %v375_v3  ;;  %v3364_v3 = vcombine.low %v456_v54, %v460_v55 }
  0xbc   : > { %v386_v5 = vld [vmem:[#allocation2] sm:$0x7f] }
  0xbd   : > { %v387_v6 = vsel %vm385_vm6, %v381_v4, %v386_v5  ;;  %v3371_v4 = vcombine.high %v463_v60, %v467_v61  ;;  %v3373_v5 = vcombine.high %v464_v62, %v468_v63  ;;  %v497_v62 = vsub.s32 6, %v4536_v24 }
  0xbe   : > { %388 = vst [vmem:[#allocation2] sm:$0x7f] %v387_v6  ;;  %v3370_v6 = vcombine.low %v463_v60, %v467_v61  ;;  %v489_v61 = vsub.s32 4, %v4536_v24  ;;  %v493_v63 = vsub.s32 5, %v4536_v24 }
  0xc5   : > { %v4334_v14 = vld [vmem:[#allocation2] sm:$0xff] }
  0xc6   : > { %908 = vmatmul.mubr.bf16.vlgmr.msra.gmra.mrb[0].mxu0 %v4334_v14  ;;  %951 = vmatmul.mubr.bf16.vlgmr.msra.gmra.mrb[0].mxu1 %v4334_v14 }
  0xc7   : > { %962 = vmatpush1.bf16.msra.mxu0 %v3306_v43  ;;  %1005 = vmatpush1.bf16.msra.mxu1 %v3308_v47  ;;  %v3349_v43 = vcombine.high %v440_v38, %v444_v39  ;;  %v452_v47 = vld [vmem:[%s5183_s1 + $0x1b8] sm:$0xff] }
  0xc8   : > { %963 = vmatprep.subr.bf16.mxu0 %v3315_v10  ;;  %1006 = vmatprep.subr.bf16.mxu1 %v3317_v11  ;;  %v3357_v51 = vcombine.high %v448_v46, %v452_v47  ;;  %v3356_v57 = vcombine.low %v448_v46, %v452_v47  ;;  %v4446_v10 = vld [vmem:[%s5185_s3 + $0x8] sm:$0xff]   ;;  %v4453_v11 = vld [vmem:[%s5185_s3 + $0x50] sm:$0xff]  }
  0xc9   : > { %3376 = vmatprep.mubr.msk.bf16.mxu0 %vm871_vm14, %v4306_v49  ;;  %3377 = vmatprep.mubr.msk.bf16.mxu1 %vm871_vm14, %v4306_v49  ;;  %v3348_v49 = vcombine.low %v440_v38, %v444_v39  ;;  %vm1402_vm14 = vcmask 1040384  }
  0xca   : > { %vm4620_vm8 = vmand %vm1402_vm14, %vm325_vm7  ;;  %vm1448_vm7 = vcmask 1047552  }
  0xcb   : > { %964 = vmatpush1.bf16.msra.mxu0 %v3314_v17  ;;  %1007 = vmatpush1.bf16.msra.mxu1 %v3316_v18  ;;  %v4495_v17 = vld [vmem:[%s5185_s3 + $0x68] sm:$0xff]   ;;  %vm4726_vm9 = vmand %vm1448_vm7, %vm336_vm3 }
  0xcc   : > { %965 = vmatprep.subr.bf16.mxu0 %v3323_v19  ;;  %1008 = vmatprep.subr.bf16.mxu1 %v3325_v20  ;;  %v4504_v18 = vld [vmem:[%s5185_s3 + $0x28] sm:$0xff]   ;;  %v4511_v19 = vld [vmem:[%s5185_s3 + $0x70] sm:$0xff]   ;;  %vm4731_vm11 = vmand %vm1448_vm7, %vm358_vm12 }
  0xcd   : > { %v4516_v20 = vld [vmem:[%s5185_s3 + $0x30] sm:$0xff]  }
  0xcf   : > { %966 = vmatpush1.bf16.msra.mxu0 %v3322_v25  ;;  %1009 = vmatpush1.bf16.msra.mxu1 %v3324_v26  ;;  %v473_v25 = vsub.s32 0, %v4536_v24  ;;  %v481_v26 = vsub.s32 2, %v4536_v24 }
  0xd0   : > { %967 = vmatprep.subr.bf16.mxu0 %v3331_v27  ;;  %1010 = vmatprep.subr.bf16.mxu1 %v3333_v28  ;;  %v4543_v27 = vld [vmem:[%s5184_s2] sm:$0xff]  ;;  %v477_v28 = vsub.s32 1, %v4536_v24 }
  0xd1   : > { %v474_v30 = vrot.slane %v4543_v27, %v473_v25  ;;  %v482_v31 = vrot.slane %v4543_v27, %v481_v26 }
  0xd2   : > { %v478_v32 = vrot.slane %v4543_v27, %v477_v28 }
  0xd3   : > { %968 = vmatpush1.bf16.msra.mxu0 %v3330_v33  ;;  %1011 = vmatpush1.bf16.msra.mxu1 %v3332_v34  ;;  %v486_v33 = vrot.slane %v4543_v27, %v485_v29 }
  0xd4   : > { %969 = vmatprep.subr.bf16.mxu0 %v3339_v35  ;;  %1012 = vmatprep.subr.bf16.mxu1 %v3341_v1 }
  0xd7   : > { %970 = vmatpush1.bf16.msra.mxu0 %v3338_v40  ;;  %1013 = vmatpush1.bf16.msra.mxu1 %v3340_v41 }
  0xd8   : > { %971 = vmatprep.subr.bf16.mxu0 %v3347_v42  ;;  %1014 = vmatprep.subr.bf16.mxu1 %v3349_v43 }
  0xdb   : > { %972 = vmatpush1.bf16.msra.mxu0 %v3346_v48  ;;  %1015 = vmatpush1.bf16.msra.mxu1 %v3348_v49 }
  0xdc   : > { %973 = vmatprep.subr.bf16.mxu0 %v3355_v50  ;;  %1016 = vmatprep.subr.bf16.mxu1 %v3357_v51 }
  0xdf   : > { %974 = vmatpush1.bf16.msra.mxu0 %v3354_v56  ;;  %1017 = vmatpush1.bf16.msra.mxu1 %v3356_v57 }
  0xe0   : > { %975 = vmatprep.subr.bf16.mxu0 %v3363_v58  ;;  %1018 = vmatprep.subr.bf16.mxu1 %v3365_v59 }
  0xe3   : > { %976 = vmatpush1.bf16.msra.mxu0 %v3362_v2  ;;  %1019 = vmatpush1.bf16.msra.mxu1 %v3364_v3  ;;  %v501_v2 = vsub.s32 7, %v4536_v24  ;;  %v490_v3 = vrot.slane %v4543_v27, %v489_v61  ;;  %v3930_v61 = vld [vmem:[%s5187_s5 + $0xd8] sm:$0xff]  }
  0xe4   : > { %977 = vmatprep.subr.bf16.mxu0 %v3371_v4  ;;  %1020 = vmatprep.subr.bf16.mxu1 %v3373_v5  ;;  %v498_v4 = vrot.slane %v4543_v27, %v497_v62  ;;  %v494_v5 = vrot.slane %v4543_v27, %v493_v63  ;;  %v3931_v62 = vld [vmem:[%s5187_s5 + $0x98] sm:$0xff]   ;;  %v3934_v63 = vld [vmem:[%s5187_s5 + $0xe0] sm:$0xff]  }
  0xe7   : > { %978 = vmatpush1.bf16.msra.mxu0 %v3370_v6  ;;  %1021 = vmatpush1.bf16.msra.mxu1 %v3372_v7  ;;  %v502_v6 = vrot.slane %v4543_v27, %v501_v2  ;;  %v3935_v2 = vld [vmem:[%s5187_s5 + $0xa0] sm:$0xff]  }
  0xe8   : > { %3559 = vmatprep.subr.bf16.mxu0 %v3884_v0  ;;  %3581 = vmatprep.subr.bf16.mxu1 %v3884_v0 }
  0xea   : > { %994 = vmatmul.mubr.bf16.vlgmr.msra.gmra.mrb[4].mxu0 %v4334_v14  ;;  %1037 = vmatmul.mubr.bf16.vlgmr.msra.gmra.mrb[4].mxu1 %v4334_v14  ;;  %v4474_v14 = vld [vmem:[%s5185_s3 + $0x18] sm:$0xff]  }
  0xeb   : > { %3560 = vmatpush3.bf16.msra.mxu0 %v4432_v8  ;;  %3582 = vmatpush3.bf16.msra.mxu1 %v4432_v8 }
  0xec   : > { %3561 = vmatprep.subr.bf16.mxu0 %v4437_v9  ;;  %3583 = vmatprep.subr.bf16.mxu1 %v4437_v9 }
  0xef   : > { %3562 = vmatpush3.bf16.msra.mxu0 %v4446_v10  ;;  %3584 = vmatpush3.bf16.msra.mxu1 %v4446_v10 }
  0xf0   : > { %3563 = vmatprep.subr.bf16.mxu0 %v4453_v11  ;;  %3585 = vmatprep.subr.bf16.mxu1 %v4453_v11 }
  0xf3   : > { %3564 = vmatpush3.bf16.msra.mxu0 %v4460_v12  ;;  %3586 = vmatpush3.bf16.msra.mxu1 %v4460_v12 }
  0xf4   : > { %3565 = vmatprep.subr.bf16.mxu0 %v4467_v13  ;;  %3587 = vmatprep.subr.bf16.mxu1 %v4467_v13 }
  0xf7   : > { %3566 = vmatpush3.bf16.msra.mxu0 %v4474_v14  ;;  %3588 = vmatpush3.bf16.msra.mxu1 %v4474_v14 }
  0xf8   : > { %3567 = vmatprep.subr.bf16.mxu0 %v4481_v15  ;;  %3589 = vmatprep.subr.bf16.mxu1 %v4481_v15 }
  0xfb   : > { %3568 = vmatpush3.bf16.msra.mxu0 %v4488_v16  ;;  %3590 = vmatpush3.bf16.msra.mxu1 %v4488_v16 }
  0xfc   : > { %3569 = vmatprep.subr.bf16.mxu0 %v4495_v17  ;;  %3591 = vmatprep.subr.bf16.mxu1 %v4495_v17 }
  0xff   : > { %3570 = vmatpush3.bf16.msra.mxu0 %v4504_v18  ;;  %3592 = vmatpush3.bf16.msra.mxu1 %v4504_v18 }
 0x100   : > { %3571 = vmatprep.subr.bf16.mxu0 %v4511_v19  ;;  %3593 = vmatprep.subr.bf16.mxu1 %v4511_v19 }
 0x103   : > { %3572 = vmatpush3.bf16.msra.mxu0 %v4516_v20  ;;  %3594 = vmatpush3.bf16.msra.mxu1 %v4516_v20 }
 0x104   : > { %3573 = vmatprep.subr.bf16.mxu0 %v4525_v21  ;;  %3595 = vmatprep.subr.bf16.mxu1 %v4525_v21 }
 0x107   : > { %3574 = vmatpush3.bf16.msra.mxu0 %v4530_v22  ;;  %3596 = vmatpush3.bf16.msra.mxu1 %v4530_v22 }
 0x108   : > { %3603 = vmatprep.subr.bf16.mxu0 %v3884_v0  ;;  %3625 = vmatprep.subr.bf16.mxu1 %v3884_v0 }
 0x199   : > { %v909_v34 = vpop.f32.mrb[0].mxu0  ;;  %v952_v35 = vpop.f32.mrb[0].mxu1 }
 0x19a   : > { %v910_v1 = vadd.f32 %v909_v34, %v474_v30  ;;  %v953_v36 = vadd.f32 %v952_v35, %v482_v31  ;;  %v911_v37 = vpop.f32.mrb[1].mxu0  ;;  %v954_v38 = vpop.f32.mrb[1].mxu1 }
 0x19b   : > { %v912_v39 = vadd.f32 %v911_v37, %v478_v32  ;;  %v955_v40 = vadd.f32 %v954_v38, %v486_v33  ;;  %v913_v41 = vpop.f32.mrb[2].mxu0  ;;  %v956_v42 = vpop.f32.mrb[2].mxu1  ;;  %v3904_v37 = vld [vmem:[%s5187_s5 + $0x50] sm:$0xff]  }
 0x19c   : > { %v914_v43 = vadd.f32 %v913_v41, %v474_v30  ;;  %v957_v44 = vadd.f32 %v956_v42, %v482_v31  ;;  %v915_v45 = vpop.f32.mrb[3].mxu0  ;;  %v958_v46 = vpop.f32.mrb[3].mxu1  ;;  %v1047_v49 = vmax.f32 %v910_v1, 0.0  ;;  %v1049_v50 = vmax.f32 %v953_v36, 0.0  ;;  %v3901_v1 = vld [vmem:[%s5187_s5] sm:$0xff]   ;;  %v3903_v36 = vld [vmem:[%s5187_s5 + $0x8] sm:$0xff]  }
 0x19d   : > { %v916_v47 = vadd.f32 %v915_v45, %v478_v32  ;;  %v959_v48 = vadd.f32 %v958_v46, %v486_v33  ;;  %v1048_v53 = vmax.f32 %v912_v39, 0.0  ;;  %v1050_v54 = vmax.f32 %v955_v40, 0.0  ;;  %v3905_v38 = vld [vmem:[%s5187_s5 + $0x10] sm:$0xff]   ;;  %v3906_v39 = vld [vmem:[%s5187_s5 + $0x58] sm:$0xff]   ;;  %v3908_v41 = vld [vmem:[%s5187_s5 + $0x60] sm:$0xff]  }
 0x19e   : > { %v1055_v51 = vmax.f32 %v914_v43, 0.0  ;;  %v1057_v52 = vmax.f32 %v957_v44, 0.0  ;;  %v3907_v40 = vld [vmem:[%s5187_s5 + $0x18] sm:$0xff]   ;;  %v3909_v42 = vld [vmem:[%s5187_s5 + $0x20] sm:$0xff]   ;;  %v1404_v44 = vld [vmem:[#allocation3 + $0x20] sm:$0x1] }
 0x19f   : > { %v1056_v55 = vmax.f32 %v916_v47, 0.0  ;;  %v1058_v56 = vmax.f32 %v959_v48, 0.0  ;;  %v1407_v45 = vld [vmem:[#allocation3 + $0x28] sm:$0x1]  ;;  %v3910_v46 = vld [vmem:[%s5187_s5 + $0x68] sm:$0xff]   ;;  %v1405_v47 = vsel %vm4620_vm8, 0, %v1404_v44 }
 0x1a0   : > { %v1063_v57 = vpack.c.bf16 %v1055_v51, %v1047_v49  ;;  %v1065_v58 = vpack.c.bf16 %v1057_v52, %v1049_v50  ;;  %v1408_v48 = vsel %vm4620_vm8, 0, %v1407_v45  ;;  %v3911_v49 = vld [vmem:[%s5187_s5 + $0x28] sm:$0xff]   ;;  %1406 = vst [vmem:[#allocation3 + $0x20] sm:$0x1] %v1405_v47  ;;  %v3912_v50 = vld [vmem:[%s5187_s5 + $0x70] sm:$0xff]   ;;  %v3914_v52 = vld [vmem:[%s5187_s5 + $0x78] sm:$0xff]  }
 0x1a1   : > { %v1064_v59 = vpack.c.bf16 %v1056_v55, %v1048_v53  ;;  %v1066_v60 = vpack.c.bf16 %v1058_v56, %v1050_v54  ;;  %1409 = vst [vmem:[#allocation3 + $0x28] sm:$0x1] %v1408_v48  ;;  %v3913_v51 = vld [vmem:[%s5187_s5 + $0x30] sm:$0xff]   ;;  %v3915_v53 = vld [vmem:[%s5187_s5 + $0x38] sm:$0xff]   ;;  %v3916_v54 = vld [vmem:[%s5187_s5 + $0x140] sm:$0xff]  }
 0x1a2   : > { %v3918_v55 = vld [vmem:[%s5187_s5 + $0xc0] sm:$0xff]   ;;  %v1493_v48 = vld [vmem:[#allocation3 + $0x60] sm:$0xff]  ;;  %v3953_v43 = vld [vmem:[%s5187_s5 + $0x208] sm:$0xff]  }
 0x1a3   : > { %1238 = vmatprep.mubr.bf16.mxu0 %v1064_v59  ;;  %1282 = vmatprep.mubr.bf16.mxu1 %v1066_v60  ;;  %v3919_v56 = vld [vmem:[%s5187_s5 + $0x80] sm:$0xff]   ;;  %v3926_v59 = vld [vmem:[%s5187_s5 + $0xd0] sm:$0xff]  }
 0x1a4   : > { %1239 = vmatmul.mubr.bf16.vlgmr.msra.gmra.mrb[8].mxu0 %v1063_v57  ;;  %1283 = vmatmul.mubr.bf16.vlgmr.msra.gmra.mrb[8].mxu1 %v1065_v58  ;;  %v3922_v57 = vld [vmem:[%s5187_s5 + $0xc8] sm:$0xff]   ;;  %v3927_v60 = vld [vmem:[%s5187_s5 + $0x90] sm:$0xff]  }
 0x1a5   : > { %3604 = vmatpush3.bf16.msra.mxu0 %v4432_v8  ;;  %3626 = vmatpush3.bf16.msra.mxu1 %v4432_v8  ;;  %v3923_v58 = vld [vmem:[%s5187_s5 + $0x88] sm:$0xff]  }
 0x1a6   : > { %3605 = vmatprep.subr.bf16.mxu0 %v4437_v9  ;;  %3627 = vmatprep.subr.bf16.mxu1 %v4437_v9 }
 0x1a7   : > { %v1450_v47 = vld [vmem:[#allocation3 + $0x20] sm:$0xff] }
 0x1a9   : > { %3606 = vmatpush3.bf16.msra.mxu0 %v4446_v10  ;;  %3628 = vmatpush3.bf16.msra.mxu1 %v4446_v10 }
 0x1aa   : > { %3607 = vmatprep.subr.bf16.mxu0 %v4453_v11  ;;  %3629 = vmatprep.subr.bf16.mxu1 %v4453_v11 }
 0x1ad   : > { %3608 = vmatpush3.bf16.msra.mxu0 %v4460_v12  ;;  %3630 = vmatpush3.bf16.msra.mxu1 %v4460_v12  ;;  %v3900_v12 = vld [vmem:[%s5187_s5 + $0x40] sm:$0xff]  }
 0x1ae   : > { %3609 = vmatprep.subr.bf16.mxu0 %v4467_v13  ;;  %3631 = vmatprep.subr.bf16.mxu1 %v4467_v13 }
 0x1b1   : > { %3610 = vmatpush3.bf16.msra.mxu0 %v4474_v14  ;;  %3632 = vmatpush3.bf16.msra.mxu1 %v4474_v14 }
 0x1b2   : > { %3611 = vmatprep.subr.bf16.mxu0 %v4481_v15  ;;  %3633 = vmatprep.subr.bf16.mxu1 %v4481_v15 }
 0x1b5   : > { %3612 = vmatpush3.bf16.msra.mxu0 %v4488_v16  ;;  %3634 = vmatpush3.bf16.msra.mxu1 %v4488_v16 }
 0x1b6   : > { %3613 = vmatprep.subr.bf16.mxu0 %v4495_v17  ;;  %3635 = vmatprep.subr.bf16.mxu1 %v4495_v17 }
 0x1b9   : > { %3614 = vmatpush3.bf16.msra.mxu0 %v4504_v18  ;;  %3636 = vmatpush3.bf16.msra.mxu1 %v4504_v18 }
 0x1ba   : > { %3615 = vmatprep.subr.bf16.mxu0 %v4511_v19  ;;  %3637 = vmatprep.subr.bf16.mxu1 %v4511_v19 }
 0x1bd   : > { %v995_v7 = vpop.f32.mrb[4].mxu0  ;;  %v1038_v0 = vpop.f32.mrb[4].mxu1  ;;  %3616 = vmatpush3.bf16.msra.mxu0 %v4516_v20  ;;  %3638 = vmatpush3.bf16.msra.mxu1 %v4516_v20 }
 0x1be   : > { %v996_v8 = vadd.f32 %v995_v7, %v490_v3  ;;  %v1039_v9 = vadd.f32 %v1038_v0, %v498_v4  ;;  %v997_v10 = vpop.f32.mrb[5].mxu0  ;;  %v1040_v11 = vpop.f32.mrb[5].mxu1  ;;  %3617 = vmatprep.subr.bf16.mxu0 %v4525_v21  ;;  %3639 = vmatprep.subr.bf16.mxu1 %v4525_v21  ;;  %v3939_v0 = vld [vmem:[%s5187_s5 + $0xa8] sm:$0xff]  }
 0x1bf   : > { %v998_v13 = vadd.f32 %v997_v10, %v494_v5  ;;  %v1041_v14 = vadd.f32 %v1040_v11, %v502_v6  ;;  %v999_v15 = vpop.f32.mrb[6].mxu0  ;;  %v1042_v16 = vpop.f32.mrb[6].mxu1  ;;  %v3946_v10 = vld [vmem:[%s5187_s5 + $0xf8] sm:$0xff]  }
 0x1c0   : > { %v1000_v17 = vadd.f32 %v999_v15, %v490_v3  ;;  %v1043_v18 = vadd.f32 %v1042_v16, %v498_v4  ;;  %v1001_v19 = vpop.f32.mrb[7].mxu0  ;;  %v1044_v20 = vpop.f32.mrb[7].mxu1  ;;  %v1051_v25 = vmax.f32 %v996_v8, 0.0  ;;  %v1053_v21 = vmax.f32 %v1039_v9, 0.0  ;;  %v1410_v3 = vld [vmem:[#allocation3 + $0x30] sm:$0x1] }
 0x1c1   : > { %v1002_v23 = vadd.f32 %v1001_v19, %v494_v5  ;;  %v1045_v24 = vadd.f32 %v1044_v20, %v502_v6  ;;  %3618 = vmatpush3.bf16.msra.mxu0 %v4530_v22  ;;  %3640 = vmatpush3.bf16.msra.mxu1 %v4530_v22  ;;  %v1052_v28 = vmax.f32 %v998_v13, 0.0  ;;  %v1054_v29 = vmax.f32 %v1041_v14, 0.0  ;;  %v3902_v22 = vld [vmem:[%s5187_s5 + $0x48] sm:$0xff]   ;;  %v3942_v8 = vld [vmem:[%s5187_s5 + $0xf0] sm:$0xff]   ;;  %v3947_v11 = vld [vmem:[%s5187_s5 + $0xb8] sm:$0xff]  }
 0x1c2   : > { %v1059_v26 = vmax.f32 %v1000_v17, 0.0  ;;  %v1061_v27 = vmax.f32 %v1043_v18, 0.0  ;;  %3647 = vmatprep.subr.bf16.mxu0 %v3900_v12  ;;  %3669 = vmatprep.subr.bf16.mxu1 %v3918_v55  ;;  %v1413_v4 = vld [vmem:[#allocation3 + $0x38] sm:$0x1]  ;;  %v1411_v6 = vsel %vm4620_vm8, 0, %v1410_v3  ;;  %v3943_v9 = vld [vmem:[%s5187_s5 + $0xb0] sm:$0xff]  }
 0x1c3   : > { %v1060_v30 = vmax.f32 %v1002_v23, 0.0  ;;  %v1062_v31 = vmax.f32 %v1045_v24, 0.0  ;;  %v3938_v5 = vld [vmem:[%s5187_s5 + $0xe8] sm:$0xff]   ;;  %v1414_v7 = vsel %vm4620_vm8, 0, %v1413_v4  ;;  %1412 = vst [vmem:[#allocation3 + $0x30] sm:$0x1] %v1411_v6 }
 0x1c4   : > { %v1067_v32 = vpack.c.bf16 %v1059_v26, %v1051_v25  ;;  %v1069_v33 = vpack.c.bf16 %v1061_v27, %v1053_v21  ;;  %1415 = vst [vmem:[#allocation3 + $0x38] sm:$0x1] %v1414_v7  ;;  %v3950_v12 = vld [vmem:[%s5187_s5 + $0x1c0] sm:$0xff]   ;;  %v3921_v3 = vld [vmem:[%s5187_s5 + $0x108] sm:$0xff]   ;;  %v3924_v4 = vld [vmem:[%s5187_s5 + $0x150] sm:$0xff]  }
 0x1c5   : > { %v1068_v34 = vpack.c.bf16 %v1060_v30, %v1052_v28  ;;  %v1070_v35 = vpack.c.bf16 %v1062_v31, %v1054_v29  ;;  %v4707_v15 = vld [vmem:[%s5186_s4] ss:$0 sm:$0xff]  ;;  %v3928_v6 = vld [vmem:[%s5187_s5 + $0x158] sm:$0xff]  }
 0x1c6   : > { %v3929_v7 = vld [vmem:[%s5187_s5 + $0x118] sm:$0xff]  }
 0x1c7   : > { %1326 = vmatprep.mubr.bf16.mxu0 %v1068_v34  ;;  %1370 = vmatprep.mubr.bf16.mxu1 %v1070_v35 }
 0x1c8   : > { %1327 = vmatmul.mubr.bf16.vlgmr.msra.gmra.mrb[12].mxu0 %v1067_v32  ;;  %1371 = vmatmul.mubr.bf16.vlgmr.msra.gmra.mrb[12].mxu1 %v1069_v33 }
 0x1c9   : > { %3648 = vmatpush3.bf16.msra.mxu0 %v3901_v1  ;;  %3670 = vmatpush3.bf16.msra.mxu1 %v3919_v56 }
 0x1ca   : > { %3649 = vmatprep.subr.bf16.mxu0 %v3902_v22  ;;  %3671 = vmatprep.subr.bf16.mxu1 %v3922_v57 }
 0x1cd   : > { %3650 = vmatpush3.bf16.msra.mxu0 %v3903_v36  ;;  %3672 = vmatpush3.bf16.msra.mxu1 %v3923_v58 }
 0x1ce   : > { %3651 = vmatprep.subr.bf16.mxu0 %v3904_v37  ;;  %3673 = vmatprep.subr.bf16.mxu1 %v3926_v59 }
 0x1d1   : > { %3652 = vmatpush3.bf16.msra.mxu0 %v3905_v38  ;;  %3674 = vmatpush3.bf16.msra.mxu1 %v3927_v60 }
 0x1d2   : > { %3653 = vmatprep.subr.bf16.mxu0 %v3906_v39  ;;  %3675 = vmatprep.subr.bf16.mxu1 %v3930_v61 }
 0x1d5   : > { %3654 = vmatpush3.bf16.msra.mxu0 %v3907_v40  ;;  %3676 = vmatpush3.bf16.msra.mxu1 %v3931_v62  ;;  %v3917_v62 = vld [vmem:[%s5187_s5 + $0x100] sm:$0xff]  }
 0x1d6   : > { %3655 = vmatprep.subr.bf16.mxu0 %v3908_v41  ;;  %3677 = vmatprep.subr.bf16.mxu1 %v3934_v63 }
 0x1d9   : > { %3656 = vmatpush3.bf16.msra.mxu0 %v3909_v42  ;;  %3678 = vmatpush3.bf16.msra.mxu1 %v3935_v2  ;;  %v3920_v2 = vld [vmem:[%s5187_s5 + $0x148] sm:$0xff]  }
 0x1da   : > { %3657 = vmatprep.subr.bf16.mxu0 %v3910_v46  ;;  %3679 = vmatprep.subr.bf16.mxu1 %v3938_v5  ;;  %v3925_v5 = vld [vmem:[%s5187_s5 + $0x110] sm:$0xff]  }
 0x1dd   : > { %3658 = vmatpush3.bf16.msra.mxu0 %v3911_v49  ;;  %3680 = vmatpush3.bf16.msra.mxu1 %v3939_v0  ;;  %v3932_v0 = vld [vmem:[%s5187_s5 + $0x160] sm:$0xff]  }
 0x1de   : > { %3659 = vmatprep.subr.bf16.mxu0 %v3912_v50  ;;  %3681 = vmatprep.subr.bf16.mxu1 %v3942_v8 }
 0x1e1   : > { %3660 = vmatpush3.bf16.msra.mxu0 %v3913_v51  ;;  %3682 = vmatpush3.bf16.msra.mxu1 %v3943_v9 }
 0x1e2   : > { %3661 = vmatprep.subr.bf16.mxu0 %v3914_v52  ;;  %3683 = vmatprep.subr.bf16.mxu1 %v3946_v10 }
 0x1e5   : > { %3662 = vmatpush3.bf16.msra.mxu0 %v3915_v53  ;;  %3684 = vmatpush3.bf16.msra.mxu1 %v3947_v11  ;;  %v1453_v53 = vld [vmem:[#allocation3 + $0x28] sm:$0xff] }
 0x1e6   : > { %3691 = vmatprep.subr.bf16.mxu0 %v3916_v54  ;;  %3713 = vmatprep.subr.bf16.mxu1 %v3950_v12  ;;  %v1496_v54 = vld [vmem:[#allocation3 + $0x68] sm:$0xff]  ;;  %v3933_v12 = vld [vmem:[%s5187_s5 + $0x120] sm:$0xff]  }
 0x277   : > { %v3575_v13 = vpop.f32.mrb[8].mxu0  ;;  %v3597_v14 = vpop.f32.mrb[8].mxu1 }
 0x278   : > { %v3576_v16 = vpop.f32.mrb[9].mxu0  ;;  %v3598_v17 = vpop.f32.mrb[9].mxu1 }
 0x279   : > { %v3577_v18 = vadd.f32 %v3576_v16, %v3575_v13  ;;  %v3599_v19 = vadd.f32 %v3598_v17, %v3597_v14  ;;  %v3578_v20 = vpop.f32.mrb[10].mxu0  ;;  %v3600_v23 = vpop.f32.mrb[10].mxu1 }
 0x27a   : > { %v3579_v24 = vpop.f32.mrb[11].mxu0  ;;  %v3601_v25 = vpop.f32.mrb[11].mxu1 }
 0x27b   : > { %v1241_v21 = vadd.f32 %v3577_v18, %v4707_v15  ;;  %v1285_v26 = vadd.f32 %v3599_v19, %v4707_v15  ;;  %v3580_v27 = vadd.f32 %v3579_v24, %v3578_v20  ;;  %v3602_v28 = vadd.f32 %v3601_v25, %v3600_v23  ;;  %v3936_v18 = vld [vmem:[%s5187_s5 + $0x168] sm:$0xff]  }
 0x27d   : > { %v1244_v29 = vadd.f32 %v3580_v27, %v4707_v15  ;;  %v1288_v30 = vadd.f32 %v3602_v28, %v4707_v15  ;;  %v1247_v31 = vmax.f32 %v1241_v21, 0.0  ;;  %v1291_v32 = vmax.f32 %v1285_v26, 0.0  ;;  %v3937_v26 = vld [vmem:[%s5187_s5 + $0x128] sm:$0xff]  }
 0x27f   : > { %v1248_v33 = vmax.f32 %v1244_v29, 0.0  ;;  %v1292_v34 = vmax.f32 %v1288_v30, 0.0  ;;  %v3940_v29 = vld [vmem:[%s5187_s5 + $0x170] sm:$0xff]  }
 0x281   : > { %v4713_v35 = vpack.c.bf16 %v1248_v33, %v1247_v31  ;;  %v4715_v1 = vpack.c.bf16 %v1292_v34, %v1291_v32  ;;  %v3941_v34 = vld [vmem:[%s5187_s5 + $0x130] sm:$0xff]  }
 0x283   : > { %v1390_v22 = vrot.slane %v4713_v35, 7  ;;  %v1417_v36 = vshrl.u32 %v4713_v35, 16  ;;  %v1420_v37 = vshll.u32 %v4713_v35, 16  ;;  %v1509_v38 = vrot.slane %v4713_v35, 1 }
 0x284   : > { %v1391_v39 = vrot.slane %v4715_v1, 7  ;;  %v1424_v40 = vshrl.u32 %v4715_v1, 16  ;;  %v1427_v41 = vshll.u32 %v4715_v1, 16  ;;  %v1510_v42 = vrot.slane %v4715_v1, 1 }
 0x285   : > { %1398 = vst [vmem:[#allocation3] sm:$0xfe] %v1390_v22  ;;  %v1419_v44 = vrot.slane %v1417_v36, 7  ;;  %v1480_v45 = vrot.slane %v1420_v37, 1  ;;  %1517 = vst [vmem:[#allocation3 + $0x80] sm:$0x7f] %v1509_v38 }
 0x286   : > { %1399 = vst [vmem:[#allocation3 + $0x8] sm:$0xfe] %v1391_v39  ;;  %v1426_v49 = vrot.slane %v1424_v40, 7  ;;  %v1482_v50 = vrot.slane %v1427_v41, 1  ;;  %1518 = vst [vmem:[#allocation3 + $0x88] sm:$0x7f] %v1510_v42 }
 0x287   : > { %v1422_v51 = vor.u32 %v1420_v37, %v1419_v44  ;;  %v1481_v52 = vor.u32 %v1480_v45, %v1417_v36 }
 0x288   : > { %v1429_v55 = vor.u32 %v1427_v41, %v1426_v49  ;;  %v1483_v56 = vor.u32 %v1482_v50, %v1424_v40  ;;  %v3948_v50 = vld [vmem:[%s5187_s5 + $0x240] sm:$0xff]  }
 0x289   : > { %v4737_v57 = vsel %vm4726_vm9, %v1422_v51, %v1450_v47  ;;  %v1494_v58 = vsel %vm4731_vm11, %v1481_v52, %v1493_v48  ;;  %v3945_v47 = vld [vmem:[%s5187_s5 + $0x138] sm:$0xff]   ;;  %v1456_v51 = vld [vmem:[#allocation3 + $0x30] sm:$0xff] }
 0x28a   : > { %1452 = vst [vmem:[#allocation3 + $0x20] sm:$0xff] %v4737_v57  ;;  %1495 = vst [vmem:[#allocation3 + $0x60] sm:$0xff] %v1494_v58  ;;  %v1454_v59 = vsel %vm4726_vm9, %v1429_v55, %v1453_v53  ;;  %v4746_v60 = vsel %vm4731_vm11, %v1483_v56, %v1496_v54  ;;  %v1499_v52 = vld [vmem:[#allocation3 + $0x70] sm:$0xff]  ;;  %v1459_v58 = vld [vmem:[#allocation3 + $0x38] sm:$0xff] }
 0x28b   : > { %1455 = vst [vmem:[#allocation3 + $0x28] sm:$0xff] %v1454_v59  ;;  %1498 = vst [vmem:[#allocation3 + $0x68] sm:$0xff] %v4746_v60 }
 0x28c   : > { %v1521_v61 = vld [vmem:[#allocation3] sm:$0xff] }
 0x28d   : > { %v1522_v63 = vld [vmem:[#allocation3 + $0x8] sm:$0xff] }
 0x28e   : > { %2853 = vmatprep.mubr.bf16.mxu0 %v1522_v63  ;;  %v3949_v63 = vld [vmem:[%s5187_s5 + $0x200] sm:$0xff]  }
 0x28f   : > { %2854 = vmatmul.mubr.bf16.vlgmr.msra.gmra.mrb[16].mxu0 %v1521_v61 }
 0x290   : > { %3692 = vmatpush3.bf16.msra.mxu0 %v3917_v62  ;;  %2935 = vmatprep.mubr.bf16.mxu0 %v1454_v59  ;;  %v1502_v59 = vld [vmem:[#allocation3 + $0x78] sm:$0xff] }
 0x291   : > { %3693 = vmatprep.subr.bf16.mxu0 %v3920_v2 }
 0x294   : > { %3694 = vmatpush3.bf16.msra.mxu0 %v3921_v3 }
 0x295   : > { %3695 = vmatprep.subr.bf16.mxu0 %v3924_v4  ;;  %v3952_v4 = vld [vmem:[%s5187_s5 + $0x248] sm:$0xff]  }
 0x298   : > { %3696 = vmatpush3.bf16.msra.mxu0 %v3925_v5 }
 0x299   : > { %3697 = vmatprep.subr.bf16.mxu0 %v3928_v6 }
 0x29b   : > { %v3619_v8 = vpop.f32.mrb[12].mxu0  ;;  %v3641_v9 = vpop.f32.mrb[12].mxu1 }
 0x29c   : > { %3698 = vmatpush3.bf16.msra.mxu0 %v3929_v7  ;;  %v3620_v10 = vpop.f32.mrb[13].mxu0  ;;  %v3642_v11 = vpop.f32.mrb[13].mxu1 }
 0x29d   : > { %v3621_v13 = vadd.f32 %v3620_v10, %v3619_v8  ;;  %v3643_v14 = vadd.f32 %v3642_v11, %v3641_v9  ;;  %v3622_v16 = vpop.f32.mrb[14].mxu0  ;;  %v3644_v17 = vpop.f32.mrb[14].mxu1  ;;  %3699 = vmatprep.subr.bf16.mxu0 %v3932_v0  ;;  %v3951_v0 = vld [vmem:[%s5187_s5 + $0x180] sm:$0xff]   ;;  %v3954_v8 = vld [vmem:[%s5187_s5 + $0x1c8] sm:$0xff]   ;;  %v3957_v9 = vld [vmem:[%s5187_s5 + $0x210] sm:$0xff]  }
 0x29e   : > { %v3623_v19 = vpop.f32.mrb[15].mxu0  ;;  %v3645_v20 = vpop.f32.mrb[15].mxu1  ;;  %v3958_v10 = vld [vmem:[%s5187_s5 + $0x1d0] sm:$0xff]   ;;  %v3960_v11 = vld [vmem:[%s5187_s5 + $0x258] sm:$0xff]  }
 0x29f   : > { %v1329_v23 = vadd.f32 %v3621_v13, %v4707_v15  ;;  %v1373_v24 = vadd.f32 %v3643_v14, %v4707_v15  ;;  %v3624_v25 = vadd.f32 %v3623_v19, %v3622_v16  ;;  %v3646_v21 = vadd.f32 %v3645_v20, %v3644_v17  ;;  %v3961_v13 = vld [vmem:[%s5187_s5 + $0x218] sm:$0xff]   ;;  %v3964_v16 = vld [vmem:[%s5187_s5 + $0x260] sm:$0xff]   ;;  %v3968_v20 = vld [vmem:[%s5187_s5 + $0x268] sm:$0xff]  }
 0x2a0   : > { %3700 = vmatpush3.bf16.msra.mxu0 %v3933_v12  ;;  %v3959_v12 = vld [vmem:[%s5187_s5 + $0x190] sm:$0xff]   ;;  %v3962_v14 = vld [vmem:[%s5187_s5 + $0x1d8] sm:$0xff]   ;;  %v3966_v19 = vld [vmem:[%s5187_s5 + $0x1e0] sm:$0xff]  }
 0x2a1   : > { %v1332_v27 = vadd.f32 %v3624_v25, %v4707_v15  ;;  %v1376_v28 = vadd.f32 %v3646_v21, %v4707_v15  ;;  %3701 = vmatprep.subr.bf16.mxu0 %v3936_v18  ;;  %v1335_v30 = vmax.f32 %v1329_v23, 0.0  ;;  %v1379_v31 = vmax.f32 %v1373_v24, 0.0  ;;  %v3944_v15 = vld [vmem:[%s5187_s5 + $0x178] sm:$0xff]   ;;  %v3965_v18 = vld [vmem:[%s5187_s5 + $0x220] sm:$0xff]   ;;  %v3969_v24 = vld [vmem:[%s5187_s5 + $0x228] sm:$0xff]  }
 0x2a2   : > { %v3963_v17 = vld [vmem:[%s5187_s5 + $0x198] sm:$0xff]   ;;  %v3967_v23 = vld [vmem:[%s5187_s5 + $0x1a0] sm:$0xff]   ;;  %v3970_v25 = vld [vmem:[%s5187_s5 + $0x1e8] sm:$0xff]  }
 0x2a3   : > { %v1336_v32 = vmax.f32 %v1332_v27, 0.0  ;;  %v1380_v33 = vmax.f32 %v1376_v28, 0.0  ;;  %v3972_v21 = vld [vmem:[%s5187_s5 + $0x270] sm:$0xff]  }
 0x2a4   : > { %3702 = vmatpush3.bf16.msra.mxu0 %v3937_v26  ;;  %v3971_v26 = vld [vmem:[%s5187_s5 + $0x1a8] sm:$0xff]   ;;  %v3973_v27 = vld [vmem:[%s5187_s5 + $0x230] sm:$0xff]  }
 0x2a5   : > { %v4792_v22 = vpack.c.bf16 %v1336_v32, %v1335_v30  ;;  %v4794_v36 = vpack.c.bf16 %v1380_v33, %v1379_v31  ;;  %3703 = vmatprep.subr.bf16.mxu0 %v3940_v29  ;;  %v3974_v28 = vld [vmem:[%s5187_s5 + $0x1f0] sm:$0xff]   ;;  %v3976_v29 = vld [vmem:[%s5187_s5 + $0x278] sm:$0xff]   ;;  %v3980_v33 = vld [vmem:[%s5187_s5 + $0x340] sm:$0xff]  }
 0x2a6   : > { %v3975_v30 = vld [vmem:[%s5187_s5 + $0x1b0] sm:$0xff]   ;;  %v3977_v31 = vld [vmem:[%s5187_s5 + $0x238] sm:$0xff]  }
 0x2a7   : > { %v1392_v37 = vrot.slane %v4792_v22, 7  ;;  %v1431_v38 = vshrl.u32 %v4792_v22, 16  ;;  %v1434_v39 = vshll.u32 %v4792_v22, 16  ;;  %v1511_v40 = vrot.slane %v4792_v22, 1  ;;  %v3978_v32 = vld [vmem:[%s5187_s5 + $0x1f8] sm:$0xff]  }
 0x2a8   : > { %v1393_v41 = vrot.slane %v4794_v36, 7  ;;  %v1438_v42 = vshrl.u32 %v4794_v36, 16  ;;  %v1441_v44 = vshll.u32 %v4794_v36, 16  ;;  %v1512_v45 = vrot.slane %v4794_v36, 1  ;;  %3704 = vmatpush3.bf16.msra.mxu0 %v3941_v34  ;;  %v3979_v34 = vld [vmem:[%s5187_s5 + $0x1b8] sm:$0xff]  }
 0x2a9   : > { %1400 = vst [vmem:[#allocation3 + $0x10] sm:$0xfe] %v1392_v37  ;;  %v1433_v48 = vrot.slane %v1431_v38, 7  ;;  %v1484_v49 = vrot.slane %v1434_v39, 1  ;;  %1519 = vst [vmem:[#allocation3 + $0x90] sm:$0x7f] %v1511_v40  ;;  %3705 = vmatprep.subr.bf16.mxu0 %v3944_v15 }
 0x2aa   : > { %1401 = vst [vmem:[#allocation3 + $0x18] sm:$0xfe] %v1393_v41  ;;  %v1440_v53 = vrot.slane %v1438_v42, 7  ;;  %v1486_v54 = vrot.slane %v1441_v44, 1  ;;  %1520 = vst [vmem:[#allocation3 + $0x98] sm:$0x7f] %v1512_v45 }
 0x2ab   : > { %v1436_v55 = vor.u32 %v1434_v39, %v1433_v48  ;;  %v1485_v56 = vor.u32 %v1484_v49, %v1431_v38  ;;  %v3981_v15 = vld [vmem:[%s5187_s5 + $0x300] sm:$0xff]   ;;  %v3984_v38 = vld [vmem:[%s5187_s5 + $0x348] sm:$0xff]   ;;  %v3992_v45 = vld [vmem:[%s5187_s5 + $0x358] sm:$0xff]  }
 0x2ac   : > { %v1443_v61 = vor.u32 %v1441_v44, %v1440_v53  ;;  %v1487_v62 = vor.u32 %v1486_v54, %v1438_v42  ;;  %3706 = vmatpush3.bf16.msra.mxu0 %v3945_v47  ;;  %v3982_v37 = vld [vmem:[%s5187_s5 + $0x2c0] sm:$0xff]   ;;  %v3985_v40 = vld [vmem:[%s5187_s5 + $0x308] sm:$0xff]   ;;  %v3989_v42 = vld [vmem:[%s5187_s5 + $0x310] sm:$0xff]  }
 0x2ad   : > { %v4818_v2 = vsel %vm4726_vm9, %v1436_v55, %v1456_v51  ;;  %v4822_v3 = vsel %vm4731_vm11, %v1485_v56, %v1499_v52  ;;  %3735 = vmatprep.subr.bf16.mxu0 %v3948_v50  ;;  %v3983_v39 = vld [vmem:[%s5187_s5 + $0x280] sm:$0xff]   ;;  %v3986_v41 = vld [vmem:[%s5187_s5 + $0x2c8] sm:$0xff]   ;;  %v3990_v44 = vld [vmem:[%s5187_s5 + $0x2d0] sm:$0xff]  }
 0x2ae   : > { %1458 = vst [vmem:[#allocation3 + $0x30] sm:$0xff] %v4818_v2  ;;  %1501 = vst [vmem:[#allocation3 + $0x70] sm:$0xff] %v4822_v3  ;;  %v1460_v5 = vsel %vm4726_vm9, %v1443_v61, %v1459_v58  ;;  %v4833_v6 = vsel %vm4731_vm11, %v1487_v62, %v1502_v59  ;;  %v3993_v47 = vld [vmem:[%s5187_s5 + $0x318] sm:$0xff]   ;;  %v3996_v49 = vld [vmem:[%s5187_s5 + $0x360] sm:$0xff]  }
 0x2af   : > { %1461 = vst [vmem:[#allocation3 + $0x38] sm:$0xff] %v1460_v5  ;;  %1504 = vst [vmem:[#allocation3 + $0x78] sm:$0xff] %v4833_v6  ;;  %2936 = vmatmul.mubr.bf16.vlgmr.msra.gmra.mrb[20].mxu0 %v4737_v57  ;;  %v3955_v57 = vld [vmem:[%s5187_s5 + $0x188] sm:$0xff]   ;;  %v3994_v48 = vld [vmem:[%s5187_s5 + $0x2d8] sm:$0xff]  }
 0x2b0   : > { %3736 = vmatpush3.bf16.msra.mxu0 %v3949_v63  ;;  %3017 = vmatprep.mubr.bf16.mxu0 %v4715_v1  ;;  %v1523_v7 = vld [vmem:[#allocation3 + $0x10] sm:$0xff]  ;;  %v3956_v1 = vld [vmem:[%s5187_s5 + $0x250] sm:$0xff]   ;;  %v3995_v50 = vld [vmem:[%s5187_s5 + $0x298] sm:$0xff]  }
 0x2b1   : > { %v1524_v46 = vld [vmem:[#allocation3 + $0x18] sm:$0xff]  ;;  %3737 = vmatprep.subr.bf16.mxu0 %v3952_v4  ;;  %v3997_v51 = vld [vmem:[%s5187_s5 + $0x320] sm:$0xff]   ;;  %v4004_v58 = vld [vmem:[%s5187_s5 + $0x370] sm:$0xff]  }
 0x2b2   : > { %2894 = vmatprep.mubr.bf16.mxu1 %v1524_v46  ;;  %v3998_v52 = vld [vmem:[%s5187_s5 + $0x2e0] sm:$0xff]   ;;  %v4000_v53 = vld [vmem:[%s5187_s5 + $0x368] sm:$0xff]   ;;  %v4005_v61 = vld [vmem:[%s5187_s5 + $0x330] sm:$0xff]  }
 0x2b3   : > { %2895 = vmatmul.mubr.bf16.vlgmr.msra.gmra.mrb[16].mxu1 %v1523_v7  ;;  %v3999_v54 = vld [vmem:[%s5187_s5 + $0x2a0] sm:$0xff]   ;;  %v4001_v55 = vld [vmem:[%s5187_s5 + $0x328] sm:$0xff]   ;;  %v4006_v62 = vld [vmem:[%s5187_s5 + $0x2f0] sm:$0xff]  }
 0x2b4   : > { %3714 = vmatpush3.bf16.msra.mxu1 %v3951_v0  ;;  %3738 = vmatpush3.bf16.msra.mxu0 %v3953_v43  ;;  %v4002_v56 = vld [vmem:[%s5187_s5 + $0x2e8] sm:$0xff]   ;;  %v4008_v63 = vld [vmem:[%s5187_s5 + $0x378] sm:$0xff]   ;;  %v4012_v7 = vld [vmem:[%s5187_s5 + $0x440] sm:$0xff]  }
 0x2b5   : > { %3715 = vmatprep.subr.bf16.mxu1 %v3954_v8  ;;  %2976 = vmatprep.mubr.bf16.mxu1 %v1460_v5  ;;  %v4003_v59 = vld [vmem:[%s5187_s5 + $0x2a8] sm:$0xff]   ;;  %v4009_v4 = vld [vmem:[%s5187_s5 + $0x338] sm:$0xff]   ;;  %v4013_v43 = vld [vmem:[%s5187_s5 + $0x400] sm:$0xff]  }
 0x2b6   : > { %3739 = vmatprep.subr.bf16.mxu0 %v3956_v1  ;;  %v4010_v5 = vld [vmem:[%s5187_s5 + $0x2f8] sm:$0xff]   ;;  %v4014_v46 = vld [vmem:[%s5187_s5 + $0x3c0] sm:$0xff]   ;;  %v4016_v8 = vld [vmem:[%s5187_s5 + $0x448] sm:$0xff]  }
 0x2b7   : > { %v4011_v0 = vld [vmem:[%s5187_s5 + $0x2b8] sm:$0xff]   ;;  %v1533_v1 = vld [vmem:[#allocation3 + $0x60] sm:$0xff] }
 0x2b8   : > { %3716 = vmatpush3.bf16.msra.mxu1 %v3955_v57  ;;  %3740 = vmatpush3.bf16.msra.mxu0 %v3957_v9  ;;  %v1538_v57 = vld [vmem:[#allocation3 + $0x88] sm:$0xff]  ;;  %v4015_v9 = vld [vmem:[%s5187_s5 + $0x380] sm:$0xff]  }
 0x2b9   : > { %3717 = vmatprep.subr.bf16.mxu1 %v3958_v10  ;;  %3741 = vmatprep.subr.bf16.mxu0 %v3960_v11  ;;  %v4017_v10 = vld [vmem:[%s5187_s5 + $0x408] sm:$0xff]  }
 0x2ba   : > { %v4018_v11 = vld [vmem:[%s5187_s5 + $0x3c8] sm:$0xff]  }
 0x2bc   : > { %3718 = vmatpush3.bf16.msra.mxu1 %v3959_v12  ;;  %3742 = vmatpush3.bf16.msra.mxu0 %v3961_v13  ;;  %v4020_v12 = vld [vmem:[%s5187_s5 + $0x450] sm:$0xff]   ;;  %v4019_v13 = vld [vmem:[%s5187_s5 + $0x388] sm:$0xff]  }
 0x2bd   : > { %3719 = vmatprep.subr.bf16.mxu1 %v3962_v14  ;;  %3743 = vmatprep.subr.bf16.mxu0 %v3964_v16  ;;  %v4021_v14 = vld [vmem:[%s5187_s5 + $0x410] sm:$0xff]  }
 0x2be   : > { %v4022_v16 = vld [vmem:[%s5187_s5 + $0x3d0] sm:$0xff]  }
 0x2c0   : > { %3720 = vmatpush3.bf16.msra.mxu1 %v3963_v17  ;;  %3744 = vmatpush3.bf16.msra.mxu0 %v3965_v18  ;;  %v4025_v17 = vld [vmem:[%s5187_s5 + $0x418] sm:$0xff]  }
 0x2c1   : > { %3721 = vmatprep.subr.bf16.mxu1 %v3966_v19  ;;  %3745 = vmatprep.subr.bf16.mxu0 %v3968_v20  ;;  %v4026_v18 = vld [vmem:[%s5187_s5 + $0x3d8] sm:$0xff]   ;;  %v4028_v19 = vld [vmem:[%s5187_s5 + $0x460] sm:$0xff]  }
 0x2c2   : > { %v4027_v20 = vld [vmem:[%s5187_s5 + $0x398] sm:$0xff]  }
 0x2c4   : > { %3722 = vmatpush3.bf16.msra.mxu1 %v3967_v23  ;;  %3746 = vmatpush3.bf16.msra.mxu0 %v3969_v24  ;;  %v4029_v23 = vld [vmem:[%s5187_s5 + $0x420] sm:$0xff]  }
 0x2c5   : > { %3723 = vmatprep.subr.bf16.mxu1 %v3970_v25  ;;  %3747 = vmatprep.subr.bf16.mxu0 %v3972_v21  ;;  %v4030_v24 = vld [vmem:[%s5187_s5 + $0x3e0] sm:$0xff]   ;;  %v4032_v25 = vld [vmem:[%s5187_s5 + $0x468] sm:$0xff]  }
 0x2c6   : > { %v4031_v21 = vld [vmem:[%s5187_s5 + $0x3a0] sm:$0xff]  }
 0x2c8   : > { %3724 = vmatpush3.bf16.msra.mxu1 %v3971_v26  ;;  %3748 = vmatpush3.bf16.msra.mxu0 %v3973_v27  ;;  %v4033_v26 = vld [vmem:[%s5187_s5 + $0x428] sm:$0xff]  }
 0x2c9   : > { %3725 = vmatprep.subr.bf16.mxu1 %v3974_v28  ;;  %3749 = vmatprep.subr.bf16.mxu0 %v3976_v29  ;;  %v4034_v27 = vld [vmem:[%s5187_s5 + $0x3e8] sm:$0xff]   ;;  %v4036_v28 = vld [vmem:[%s5187_s5 + $0x470] sm:$0xff]  }
 0x2ca   : > { %v4035_v29 = vld [vmem:[%s5187_s5 + $0x3a8] sm:$0xff]  }
 0x2cc   : > { %3726 = vmatpush3.bf16.msra.mxu1 %v3975_v30  ;;  %3750 = vmatpush3.bf16.msra.mxu0 %v3977_v31  ;;  %v4037_v30 = vld [vmem:[%s5187_s5 + $0x430] sm:$0xff]  }
 0x2cd   : > { %3727 = vmatprep.subr.bf16.mxu1 %v3978_v32  ;;  %3779 = vmatprep.subr.bf16.mxu0 %v3980_v33  ;;  %v4038_v31 = vld [vmem:[%s5187_s5 + $0x3f0] sm:$0xff]   ;;  %v4040_v32 = vld [vmem:[%s5187_s5 + $0x478] sm:$0xff]  }
 0x2ce   : > { %v4039_v33 = vld [vmem:[%s5187_s5 + $0x3b0] sm:$0xff]  }
 0x2cf   : > { %3018 = vmatmul.mubr.bf16.vlgmr.msra.gmra.mrb[24].mxu0 %v4713_v35  ;;  %v3988_v35 = vld [vmem:[%s5187_s5 + $0x350] sm:$0xff]  }
 0x2d0   : > { %3728 = vmatpush3.bf16.msra.mxu1 %v3979_v34  ;;  %3780 = vmatpush3.bf16.msra.mxu0 %v3981_v15  ;;  %v4041_v34 = vld [vmem:[%s5187_s5 + $0x438] sm:$0xff]  }
 0x2d1   : > { %3099 = vmatprep.mubr.bf16.mxu0 %v4746_v60  ;;  %3757 = vmatprep.subr.bf16.mxu1 %v3982_v37  ;;  %v3987_v60 = vld [vmem:[%s5187_s5 + $0x288] sm:$0xff]   ;;  %v4042_v15 = vld [vmem:[%s5187_s5 + $0x3f8] sm:$0xff]  }
 0x2d2   : > { %3781 = vmatprep.subr.bf16.mxu0 %v3984_v38  ;;  %v4043_v37 = vld [vmem:[%s5187_s5 + $0x3b8] sm:$0xff]   ;;  %v4044_v38 = vld [vmem:[%s5187_s5 + $0x4c0] sm:$0xff]  }
 0x2d3   : > { %2977 = vmatmul.mubr.bf16.vlgmr.msra.gmra.mrb[20].mxu1 %v4818_v2  ;;  %v4007_v2 = vld [vmem:[%s5187_s5 + $0x2b0] sm:$0xff]  }
 0x2d4   : > { %3758 = vmatpush3.bf16.msra.mxu1 %v3983_v39  ;;  %3058 = vmatprep.mubr.bf16.mxu1 %v4794_v36  ;;  %v3991_v36 = vld [vmem:[%s5187_s5 + $0x290] sm:$0xff]  }
 0x2d5   : > { %3782 = vmatpush3.bf16.msra.mxu0 %v3985_v40  ;;  %3759 = vmatprep.subr.bf16.mxu1 %v3986_v41  ;;  %v1537_v39 = vld [vmem:[#allocation3 + $0x80] sm:$0xff]  ;;  %v4045_v40 = vld [vmem:[%s5187_s5 + $0x480] sm:$0xff]   ;;  %v4046_v41 = vld [vmem:[%s5187_s5 + $0x4c8] sm:$0xff]  }
 0x2d6   : > { %3783 = vmatprep.subr.bf16.mxu0 %v3988_v35  ;;  %v1540_v35 = vld [vmem:[#allocation3 + $0x98] sm:$0xff] }
 0x2d8   : > { %3760 = vmatpush3.bf16.msra.mxu1 %v3987_v60  ;;  %v4047_v60 = vld [vmem:[%s5187_s5 + $0x488] sm:$0xff]  }
 0x2d9   : > { %3784 = vmatpush3.bf16.msra.mxu0 %v3989_v42  ;;  %3761 = vmatprep.subr.bf16.mxu1 %v3990_v44  ;;  %v4048_v42 = vld [vmem:[%s5187_s5 + $0x4d0] sm:$0xff]  }
 0x2da   : > { %3785 = vmatprep.subr.bf16.mxu0 %v3992_v45  ;;  %v4049_v44 = vld [vmem:[%s5187_s5 + $0x490] sm:$0xff]   ;;  %v4051_v45 = vld [vmem:[%s5187_s5 + $0x498] sm:$0xff]  }
 0x2dc   : > { %3762 = vmatpush3.bf16.msra.mxu1 %v3991_v36  ;;  %v4052_v36 = vld [vmem:[%s5187_s5 + $0x4e0] sm:$0xff]  }
 0x2dd   : > { %3786 = vmatpush3.bf16.msra.mxu0 %v3993_v47  ;;  %3763 = vmatprep.subr.bf16.mxu1 %v3994_v48  ;;  %v4053_v47 = vld [vmem:[%s5187_s5 + $0x4a0] sm:$0xff]   ;;  %v4054_v48 = vld [vmem:[%s5187_s5 + $0x4e8] sm:$0xff]  }
 0x2de   : > { %3787 = vmatprep.subr.bf16.mxu0 %v3996_v49  ;;  %v4055_v49 = vld [vmem:[%s5187_s5 + $0x4a8] sm:$0xff]  }
 0x2e0   : > { %3764 = vmatpush3.bf16.msra.mxu1 %v3995_v50  ;;  %v4056_v50 = vld [vmem:[%s5187_s5 + $0x4f0] sm:$0xff]  }
 0x2e1   : > { %3788 = vmatpush3.bf16.msra.mxu0 %v3997_v51  ;;  %3765 = vmatprep.subr.bf16.mxu1 %v3998_v52  ;;  %v4057_v51 = vld [vmem:[%s5187_s5 + $0x4b0] sm:$0xff]   ;;  %v4058_v52 = vld [vmem:[%s5187_s5 + $0x4f8] sm:$0xff]  }
 0x2e2   : > { %3789 = vmatprep.subr.bf16.mxu0 %v4000_v53  ;;  %v4059_v53 = vld [vmem:[%s5187_s5 + $0x4b8] sm:$0xff]  }
 0x2e4   : > { %3766 = vmatpush3.bf16.msra.mxu1 %v3999_v54  ;;  %v1539_v54 = vld [vmem:[#allocation3 + $0x90] sm:$0xff] }
 0x2e5   : > { %3790 = vmatpush3.bf16.msra.mxu0 %v4001_v55  ;;  %3767 = vmatprep.subr.bf16.mxu1 %v4002_v56 }
 0x2e6   : > { %3791 = vmatprep.subr.bf16.mxu0 %v4004_v58 }
 0x2e8   : > { %3768 = vmatpush3.bf16.msra.mxu1 %v4003_v59 }
 0x2e9   : > { %3792 = vmatpush3.bf16.msra.mxu0 %v4005_v61  ;;  %3769 = vmatprep.subr.bf16.mxu1 %v4006_v62 }
 0x2ea   : > { %3793 = vmatprep.subr.bf16.mxu0 %v4008_v63 }
 0x2ec   : > { %3770 = vmatpush3.bf16.msra.mxu1 %v4007_v2 }
 0x2ed   : > { %3794 = vmatpush3.bf16.msra.mxu0 %v4009_v4  ;;  %3771 = vmatprep.subr.bf16.mxu1 %v4010_v5 }
 0x2ee   : > { %3823 = vmatprep.subr.bf16.mxu0 %v4012_v7 }
 0x2f0   : > { %3772 = vmatpush3.bf16.msra.mxu1 %v4011_v0  ;;  %3100 = vmatmul.mubr.bf16.vlgmr.msra.gmra.mrb[28].mxu0 %v1533_v1 }
 0x2f1   : > { %3824 = vmatpush3.bf16.msra.mxu0 %v4013_v43  ;;  %3181 = vmatprep.mubr.bf16.mxu0 %v1538_v57 }
 0x2f2   : > { %3801 = vmatprep.subr.bf16.mxu1 %v4014_v46  ;;  %3825 = vmatprep.subr.bf16.mxu0 %v4016_v8 }
 0x2f3   : > { %3059 = vmatmul.mubr.bf16.vlgmr.msra.gmra.mrb[24].mxu1 %v4792_v22  ;;  %v4024_v22 = vld [vmem:[%s5187_s5 + $0x458] sm:$0xff]  }
 0x2f4   : > { %3802 = vmatpush3.bf16.msra.mxu1 %v4015_v9  ;;  %3140 = vmatprep.mubr.bf16.mxu1 %v4833_v6  ;;  %v4023_v6 = vld [vmem:[%s5187_s5 + $0x390] sm:$0xff]  }
 0x2f5   : > { %3826 = vmatpush3.bf16.msra.mxu0 %v4017_v10  ;;  %3803 = vmatprep.subr.bf16.mxu1 %v4018_v11 }
 0x2f6   : > { %3827 = vmatprep.subr.bf16.mxu0 %v4020_v12 }
 0x2f8   : > { %3804 = vmatpush3.bf16.msra.mxu1 %v4019_v13 }
 0x2f9   : > { %3828 = vmatpush3.bf16.msra.mxu0 %v4021_v14  ;;  %3805 = vmatprep.subr.bf16.mxu1 %v4022_v16 }
 0x2fa   : > { %3829 = vmatprep.subr.bf16.mxu0 %v4024_v22 }
 0x2fc   : > { %3806 = vmatpush3.bf16.msra.mxu1 %v4023_v6 }
 0x2fd   : > { %3830 = vmatpush3.bf16.msra.mxu0 %v4025_v17  ;;  %3807 = vmatprep.subr.bf16.mxu1 %v4026_v18 }
 0x2fe   : > { %3831 = vmatprep.subr.bf16.mxu0 %v4028_v19 }
 0x300   : > { %3808 = vmatpush3.bf16.msra.mxu1 %v4027_v20 }
 0x301   : > { %3832 = vmatpush3.bf16.msra.mxu0 %v4029_v23  ;;  %3809 = vmatprep.subr.bf16.mxu1 %v4030_v24 }
 0x302   : > { %3833 = vmatprep.subr.bf16.mxu0 %v4032_v25 }
 0x304   : > { %3810 = vmatpush3.bf16.msra.mxu1 %v4031_v21 }
 0x305   : > { %3834 = vmatpush3.bf16.msra.mxu0 %v4033_v26  ;;  %3811 = vmatprep.subr.bf16.mxu1 %v4034_v27 }
 0x306   : > { %3835 = vmatprep.subr.bf16.mxu0 %v4036_v28 }
 0x308   : > { %3812 = vmatpush3.bf16.msra.mxu1 %v4035_v29 }
 0x309   : > { %3836 = vmatpush3.bf16.msra.mxu0 %v4037_v30  ;;  %3813 = vmatprep.subr.bf16.mxu1 %v4038_v31 }
 0x30a   : > { %3837 = vmatprep.subr.bf16.mxu0 %v4040_v32 }
 0x30c   : > { %3814 = vmatpush3.bf16.msra.mxu1 %v4039_v33 }
 0x30d   : > { %3838 = vmatpush3.bf16.msra.mxu0 %v4041_v34  ;;  %3815 = vmatprep.subr.bf16.mxu1 %v4042_v15 }
 0x310   : > { %3816 = vmatpush3.bf16.msra.mxu1 %v4043_v37  ;;  %3182 = vmatmul.mubr.bf16.vlgmr.msra.gmra.mrb[32].mxu0 %v1537_v39 }
 0x311   : > { %3845 = vmatprep.subr.bf16.mxu1 %v4044_v38 }
 0x313   : > { %3141 = vmatmul.mubr.bf16.vlgmr.msra.gmra.mrb[28].mxu1 %v4822_v3  ;;  %v4050_v3 = vld [vmem:[%s5187_s5 + $0x4d8] sm:$0xff]  }
 0x314   : > { %3846 = vmatpush3.bf16.msra.mxu1 %v4045_v40  ;;  %3222 = vmatprep.mubr.bf16.mxu1 %v1540_v35 }
 0x315   : > { %3847 = vmatprep.subr.bf16.mxu1 %v4046_v41 }
 0x318   : > { %3848 = vmatpush3.bf16.msra.mxu1 %v4047_v60 }
 0x319   : > { %3849 = vmatprep.subr.bf16.mxu1 %v4048_v42 }
 0x31c   : > { %3850 = vmatpush3.bf16.msra.mxu1 %v4049_v44 }
 0x31d   : > { %3851 = vmatprep.subr.bf16.mxu1 %v4050_v3 }
 0x320   : > { %3852 = vmatpush3.bf16.msra.mxu1 %v4051_v45 }
 0x321   : > { %3853 = vmatprep.subr.bf16.mxu1 %v4052_v36 }
 0x324   : > { %3854 = vmatpush3.bf16.msra.mxu1 %v4053_v47 }
 0x325   : > { %3855 = vmatprep.subr.bf16.mxu1 %v4054_v48 }
 0x328   : > { %3856 = vmatpush3.bf16.msra.mxu1 %v4055_v49 }
 0x329   : > { %3857 = vmatprep.subr.bf16.mxu1 %v4056_v50 }
 0x32c   : > { %3858 = vmatpush3.bf16.msra.mxu1 %v4057_v51 }
 0x32d   : > { %3859 = vmatprep.subr.bf16.mxu1 %v4058_v52 }
 0x330   : > { %3860 = vmatpush3.bf16.msra.mxu1 %v4059_v53 }
 0x333   : > { %3223 = vmatmul.mubr.bf16.vlgmr.msra.gmra.mrb[32].mxu1 %v1539_v54 }
 0x362   : > { %v3663_v55 = vpop.f32.mrb[16].mxu0 }
 0x363   : > { %v3664_v56 = vpop.f32.mrb[17].mxu0 }
 0x364   : > { %v3665_v58 = vadd.f32 %v3664_v56, %v3663_v55  ;;  %v3666_v59 = vpop.f32.mrb[18].mxu0 }
 0x365   : > { %v3667_v61 = vpop.f32.mrb[19].mxu0 }
 0x366   : > { %v3668_v62 = vadd.f32 %v3667_v61, %v3666_v59 }
 0x382   : > { %v3707_v63 = vpop.f32.mrb[20].mxu0 }
 0x383   : > { %v3708_v2 = vpop.f32.mrb[21].mxu0 }
 0x384   : > { %v3709_v4 = vadd.f32 %v3708_v2, %v3707_v63  ;;  %v3710_v5 = vpop.f32.mrb[22].mxu0 }
 0x385   : > { %v3711_v7 = vpop.f32.mrb[23].mxu0 }
 0x386   : > { %v3712_v0 = vadd.f32 %v3711_v7, %v3710_v5  ;;  %v3685_v43 = vpop.f32.mrb[16].mxu1  ;;  %v3231_v7 = vld [vmem:[%s5188_s6] sm:$0xff] }
 0x387   : > { %v3686_v46 = vpop.f32.mrb[17].mxu1 }
 0x388   : > { %v3687_v8 = vadd.f32 %v3686_v46, %v3685_v43  ;;  %v3688_v1 = vpop.f32.mrb[18].mxu1 }
 0x389   : > { %v3689_v57 = vpop.f32.mrb[19].mxu1 }
 0x38a   : > { %v2897_v9 = vadd.f32 %v3687_v8, %v3665_v58  ;;  %v3690_v10 = vadd.f32 %v3689_v57, %v3688_v1  ;;  %v3232_v8 = vld [vmem:[%s5188_s6 + $0x8] sm:$0xff] }
 0x38c   : > { %v2900_v11 = vadd.f32 %v3690_v10, %v3668_v62  ;;  %v2938_v12 = vadd.f32 %v3709_v4, %v2897_v9 }
 0x38e   : > { %v2941_v13 = vadd.f32 %v3712_v0, %v2900_v11 }
 0x3a2   : > { %v3751_v14 = vpop.f32.mrb[24].mxu0 }
 0x3a3   : > { %v3752_v16 = vpop.f32.mrb[25].mxu0 }
 0x3a4   : > { %v3753_v22 = vadd.f32 %v3752_v16, %v3751_v14  ;;  %v3754_v6 = vpop.f32.mrb[26].mxu0 }
 0x3a5   : > { %v3755_v17 = vpop.f32.mrb[27].mxu0 }
 0x3a6   : > { %v3729_v18 = vpop.f32.mrb[20].mxu1  ;;  %v3756_v19 = vadd.f32 %v3755_v17, %v3754_v6 }
 0x3a7   : > { %v3730_v20 = vpop.f32.mrb[21].mxu1 }
 0x3a8   : > { %v3731_v23 = vadd.f32 %v3730_v20, %v3729_v18  ;;  %v3732_v24 = vpop.f32.mrb[22].mxu1 }
 0x3a9   : > { %v3733_v25 = vpop.f32.mrb[23].mxu1 }
 0x3aa   : > { %v2979_v21 = vadd.f32 %v3731_v23, %v2938_v12  ;;  %v3734_v26 = vadd.f32 %v3733_v25, %v3732_v24 }
 0x3ac   : > { %v2982_v27 = vadd.f32 %v3734_v26, %v2941_v13  ;;  %v3020_v28 = vadd.f32 %v3753_v22, %v2979_v21 }
 0x3ae   : > { %v3023_v29 = vadd.f32 %v3756_v19, %v2982_v27 }
 0x3c3   : > { %v3795_v30 = vpop.f32.mrb[28].mxu0 }
 0x3c4   : > { %v3796_v31 = vpop.f32.mrb[29].mxu0 }
 0x3c5   : > { %v3797_v32 = vadd.f32 %v3796_v31, %v3795_v30  ;;  %v3798_v33 = vpop.f32.mrb[30].mxu0 }
 0x3c6   : > { %v3773_v34 = vpop.f32.mrb[24].mxu1  ;;  %v3799_v15 = vpop.f32.mrb[31].mxu0 }
 0x3c7   : > { %v3800_v37 = vadd.f32 %v3799_v15, %v3798_v33  ;;  %v3774_v38 = vpop.f32.mrb[25].mxu1 }
 0x3c8   : > { %v3775_v39 = vadd.f32 %v3774_v38, %v3773_v34  ;;  %v3776_v40 = vpop.f32.mrb[26].mxu1 }
 0x3c9   : > { %v3777_v41 = vpop.f32.mrb[27].mxu1 }
 0x3ca   : > { %v3061_v35 = vadd.f32 %v3775_v39, %v3020_v28  ;;  %v3778_v60 = vadd.f32 %v3777_v41, %v3776_v40 }
 0x3cc   : > { %v3064_v42 = vadd.f32 %v3778_v60, %v3023_v29  ;;  %v3102_v44 = vadd.f32 %v3797_v32, %v3061_v35 }
 0x3ce   : > { %v3105_v3 = vadd.f32 %v3800_v37, %v3064_v42 }
 0x3e3   : > { %v3839_v45 = vpop.f32.mrb[32].mxu0 }
 0x3e4   : > { %v3840_v36 = vpop.f32.mrb[33].mxu0 }
 0x3e5   : > { %v3841_v47 = vadd.f32 %v3840_v36, %v3839_v45  ;;  %v3842_v48 = vpop.f32.mrb[34].mxu0 }
 0x3e6   : > { %v3817_v49 = vpop.f32.mrb[28].mxu1  ;;  %v3843_v50 = vpop.f32.mrb[35].mxu0 }
 0x3e7   : > { %v3844_v51 = vadd.f32 %v3843_v50, %v3842_v48  ;;  %v3818_v52 = vpop.f32.mrb[29].mxu1 }
 0x3e8   : > { %v3819_v53 = vadd.f32 %v3818_v52, %v3817_v49  ;;  %v3820_v54 = vpop.f32.mrb[30].mxu1 }
 0x3e9   : > { %v3821_v55 = vpop.f32.mrb[31].mxu1 }
 0x3ea   : > { %v3143_v56 = vadd.f32 %v3819_v53, %v3102_v44  ;;  %v3822_v58 = vadd.f32 %v3821_v55, %v3820_v54 }
 0x3ec   : > { %v3146_v59 = vadd.f32 %v3822_v58, %v3105_v3  ;;  %v3184_v61 = vadd.f32 %v3841_v47, %v3143_v56 }
 0x3ee   : > { %v3187_v62 = vadd.f32 %v3844_v51, %v3146_v59 }
 0x406   : > { %v3861_v63 = vpop.f32.mrb[32].mxu1 }
 0x407   : > { %v3862_v2 = vpop.f32.mrb[33].mxu1 }
 0x408   : > { %v3863_v4 = vadd.f32 %v3862_v2, %v3861_v63  ;;  %v3864_v5 = vpop.f32.mrb[34].mxu1 }
 0x409   : > { %v3865_v0 = vpop.f32.mrb[35].mxu1 }
 0x40a   : > { %v3225_v43 = vadd.f32 %v3863_v4, %v3184_v61  ;;  %v3866_v46 = vadd.f32 %v3865_v0, %v3864_v5 }
 0x40c   : > { %v3233_v1 = vadd.f32 %v3231_v7, %v3225_v43  ;;  %v3228_v57 = vadd.f32 %v3866_v46, %v3187_v62 }
 0x40e   : > { %3235 = vst [vmem:[%s278_s15] sm:$0xff] %v3233_v1  ;;  %v3234_v9 = vadd.f32 %v3232_v8, %v3228_v57 }
 0x410   : > { %3236 = vst [vmem:[%s278_s15 + $0x8] sm:$0xff] %v3234_v9 }
 0x411 PF: > { %s17_s24 = sadd.s32 1, %s4066_s24  }
 0x412   : > { %p14_p4 = scmp.ge.s32.totalorder %s17_s24, 4  }
 0x414   :  { %16 = sbr.rel (!%p14_p4) target bundleno = 1 (0x1), region = 78 }

</bundles_post_ra>
